<compile_context>
chip_gen: v6e
topology: v6e:2x2x1
jax: 0.10.0
libtpu: 0.0.40
codegen_flags: <defaults>
</compile_context>

<pallas_src>
import jax
import jax.numpy as jnp
from jax import lax
from jax.experimental import pallas as pl
from jax.experimental.pallas import tpu as pltpu


# -----------------------------------------------------------------------------
# Fused TGCN recurrence kernel: one grid step per batch element,
# full time recurrence inside the kernel.
# -----------------------------------------------------------------------------
def _build_fused_tgcn(batch, seq_len, n, hd):
    nh = n // 2

    def kernel(xb1_ref, xb2_ref, lcp_ref, lpp_ref, w1h_ref, w2h_ref, out_ref):
        # Constants: DMA'd once per grid step (constant index maps), hoisted
        # out of the time loop so they load once into vregs.
        lcp = lcp_ref[...]        # (N, N)  L with parity-permuted columns
        lpp = lpp_ref[...]        # (N, N)  L with parity-permuted rows+cols
        w1h = w1h_ref[...]        # (H, 2H)
        w2h = w2h_ref[...]        # (H, H)

        def step(t, h):
            # h: (N, H) f32, rows in parity order [0,2,4,...,1,3,5,...]
            xb1_t = xb1_ref[t]    # (N, 2H) = (L@x_t)*w1_in + b1, natural rows
            xb2_t = xb2_ref[t]    # (N, H)  = (L@x_t)*w2_in + b2, parity rows

            # graph_conv1: rows of g are in natural node order.
            lh = jnp.dot(lcp, h, preferred_element_type=jnp.float32)
            g = jax.nn.sigmoid(
                xb1_t + jnp.dot(lh, w1h, preferred_element_type=jnp.float32))

            # torch.chunk-on-flattened-output r/u == static slices + sublane
            # concat when the hidden state lives in parity row order.
            r = jnp.concatenate([g[:nh, :hd], g[:nh, hd:]], axis=0)   # (N, H)
            u = jnp.concatenate([g[nh:, :hd], g[nh:, hd:]], axis=0)   # (N, H)

            # graph_conv2 on r * hidden; result rows already in parity order.
            agg = jnp.dot(lpp, r * h, preferred_element_type=jnp.float32)
            c = jnp.tanh(
                xb2_t + jnp.dot(agg, w2h, preferred_element_type=jnp.float32))

            # GRU gate.
            return u * h + (1.0 - u) * c

        h0 = jnp.zeros((n, hd), jnp.float32)
        out_ref[...] = lax.fori_loop(0, seq_len, step, h0, unroll=True)

    grid_spec = pltpu.PrefetchScalarGridSpec(
        num_scalar_prefetch=0,
        grid=(batch,),
        in_specs=[
            # Per-batch lane-dense input streams, fully resident for the step.
            pl.BlockSpec((None, seq_len, n, 2 * hd), lambda b: (b, 0, 0, 0)),
            pl.BlockSpec((None, seq_len, n, hd), lambda b: (b, 0, 0, 0)),
            # Permuted Laplacians and hidden-state weights: constant blocks.
            pl.BlockSpec((n, n), lambda b: (0, 0)),
            pl.BlockSpec((n, n), lambda b: (0, 0)),
            pl.BlockSpec((hd, 2 * hd), lambda b: (0, 0)),
            pl.BlockSpec((hd, hd), lambda b: (0, 0)),
        ],
        out_specs=pl.BlockSpec((None, n, hd), lambda b: (b, 0, 0)),
    )
    return pl.pallas_call(
        kernel,
        out_shape=jax.ShapeDtypeStruct((batch, n, hd), jnp.float32),
        grid_spec=grid_spec,
        compiler_params=pltpu.CompilerParams(
            dimension_semantics=("parallel",)),
    )


def ttgcn_forward(params, inputs, hidden_dim):
    """tTGCN forward. inputs: (B, seq_len, N). Returns (B, N, hidden_dim) f32."""
    inputs = inputs.astype(jnp.float32)
    b, seq_len, n = inputs.shape
    assert n % 2 == 0, "parity-split kernel requires an even node count"
    hd = hidden_dim

    lap = params["laplacian"].astype(jnp.float32)
    perm = jnp.concatenate([jnp.arange(0, n, 2), jnp.arange(1, n, 2)])

    # (1) One lane-dense matmul for L @ x_t over all batches and timesteps,
    #     then fold each conv's input weight + bias in (still outside, still
    #     lane-dense) so the kernel only streams ready-made pre-activations.
    lx = jnp.einsum("nm,btm->btn", lap, inputs)                        # (B,T,N)
    xb1 = lx[..., None] * params["w1_in"].reshape(-1) \
        + params["b1"].reshape(-1)                                     # (B,T,N,2H)
    xb2 = lx[:, :, perm][..., None] * params["w2_in"].reshape(-1) \
        + params["b2"].reshape(-1)                                     # (B,T,N,H)

    # (2) Permuted Laplacians: one column-permuted copy for conv1, one fully
    #     row+col permuted copy for conv2 (merged single-dot per conv).
    l_cp = lap[:, perm]                                                # (N, N)
    l_pp = lap[perm][:, perm]                                          # (N, N)

    fused = _build_fused_tgcn(b, seq_len, n, hd)
    out_par = fused(xb1, xb2, l_cp, l_pp, params["w1_h"], params["w2_h"])

    # Rows come back in parity order; un-permute to natural node order.
    inv = jnp.argsort(perm)
    return out_par[:, inv, :]


# -----------------------------------------------------------------------------
# Parameter / Laplacian setup (glue, plain JAX)
# -----------------------------------------------------------------------------
def calculate_laplacian_with_self_loop(adj):
    a = adj + jnp.eye(adj.shape[0], dtype=adj.dtype)
    row_sum = a.sum(axis=1)
    d_inv_sqrt = jnp.power(row_sum, -0.5)
    d_inv_sqrt = jnp.where(jnp.isinf(d_inv_sqrt), 0.0, d_inv_sqrt)
    d = jnp.diag(d_inv_sqrt)
    return (a @ d).T @ d


def xavier_uniform(key, shape):
    fan_in, fan_out = shape
    limit = (6.0 / (fan_in + fan_out)) ** 0.5
    return jax.random.uniform(key, shape, jnp.float32, -limit, limit)


def init_params(key, adj, hidden_dim):
    k1, k2 = jax.random.split(key)
    h = hidden_dim
    w1 = xavier_uniform(k1, (h + 1, 2 * h))   # graph_conv1 weights
    w2 = xavier_uniform(k2, (h + 1, h))       # graph_conv2 weights
    return {
        "laplacian": calculate_laplacian_with_self_loop(adj),
        "w1_in": w1[0:1, :],                  # (1, 2H)
        "w1_h": w1[1:, :],                    # (H, 2H)
        "b1": jnp.full((1, 2 * h), 1.0, jnp.float32),   # bias = 1.0 for conv1
        "w2_in": w2[0:1, :],                  # (1, H)
        "w2_h": w2[1:, :],                    # (H, H)
        "b2": jnp.zeros((1, h), jnp.float32),           # bias = 0.0 for conv2
    }


# -----------------------------------------------------------------------------
# Pure-JAX reference mirroring the PyTorch code line-by-line (for checking)
# -----------------------------------------------------------------------------
def _gc_ref(lap, weights, biases, x, hidden_flat, num_gru_units, output_dim):
    b, n = x.shape
    inputs = x.reshape(b, n, 1)
    hs = hidden_flat.reshape(b, n, num_gru_units)
    cat = jnp.concatenate([inputs, hs], axis=2)                 # (B, N, H+1)
    cat = jnp.transpose(cat, (1, 2, 0)).reshape(n, (num_gru_units + 1) * b)
    ax = jnp.dot(lap, cat, precision=lax.Precision.HIGHEST)
    ax = ax.reshape(n, num_gru_units + 1, b)
    ax = jnp.transpose(ax, (2, 0, 1)).reshape(b * n, num_gru_units + 1)
    out = jnp.dot(ax, weights, precision=lax.Precision.HIGHEST) + biases
    return out.reshape(b, n * output_dim)


def _ttgcn_ref(params, inputs, hidden_dim):
    b, seq_len, n = inputs.shape
    lap = params["laplacian"]
    w1 = jnp.concatenate([params["w1_in"], params["w1_h"]], axis=0)
    w2 = jnp.concatenate([params["w2_in"], params["w2_h"]], axis=0)
    b1 = params["b1"][0]
    b2 = params["b2"][0]
    hidden = jnp.zeros((b, n * hidden_dim), jnp.float32)
    out = None
    for t in range(seq_len):
        x = inputs[:, t, :]
        conc = jax.nn.sigmoid(_gc_ref(lap, w1, b1, x, hidden, hidden_dim, 2 * hidden_dim))
        r, u = jnp.split(conc, 2, axis=1)
        c = jnp.tanh(_gc_ref(lap, w2, b2, x, r * hidden, hidden_dim, hidden_dim))
        hidden = u * hidden + (1.0 - u) * c
        out = hidden.reshape(b, n, hidden_dim)
    return out


# -----------------------------------------------------------------------------
if __name__ == "__main__":
    BATCH, SEQ, NUM_NODES, HIDDEN = 2, 8, 16, 32

    key = jax.random.PRNGKey(0)
    k_adj, k_x, k_p = jax.random.split(key, 3)

    # deterministic synthetic adjacency (non-negative) and inputs
    adj = jax.random.uniform(k_adj, (NUM_NODES, NUM_NODES), jnp.float32)
    inputs = jax.random.normal(k_x, (BATCH, SEQ, NUM_NODES), jnp.float32)

    params = init_params(k_p, adj, HIDDEN)

    out = ttgcn_forward(params, inputs, HIDDEN)
    out = jax.block_until_ready(out)
    assert out.shape == (BATCH, NUM_NODES, HIDDEN)

    # correctness check against a line-by-line PyTorch-equivalent JAX reference
    ref = _ttgcn_ref(params, inputs, HIDDEN)
    assert jnp.allclose(out, ref, atol=1e-3, rtol=1e-3), \
        f"max abs diff {jnp.max(jnp.abs(out - ref))}"

    print("KERNEL_OK")
</pallas_src>

<mosaic_0001>
module attributes {stable_mosaic.version = 11 : i64} {
  func.func @kernel(%arg0: i32, %arg1: memref<1x8x16x64xf32, #tpu.memory_space<vmem>>, %arg2: memref<1x8x16x32xf32, #tpu.memory_space<vmem>>, %arg3: memref<16x16xf32, #tpu.memory_space<vmem>>, %arg4: memref<16x16xf32, #tpu.memory_space<vmem>>, %arg5: memref<32x64xf32, #tpu.memory_space<vmem>>, %arg6: memref<32x32xf32, #tpu.memory_space<vmem>>, %arg7: memref<1x16x32xf32, #tpu.memory_space<vmem>>) attributes {dimension_semantics = [#tpu.dimension_semantics<parallel>], iteration_bounds = array<i64: 2>, scalar_prefetch = 0 : i64, scratch_operands = 0 : i64, tpu.core_type = #tpu.core_type<tc>, window_params = [{transform_indices = @transform_0, window_bounds = array<i64: 1, 8, 16, 64>}, {transform_indices = @transform_1, window_bounds = array<i64: 1, 8, 16, 32>}, {pipeline_mode = #tpu.pipeline_mode<synchronous>, transform_indices = @transform_2, window_bounds = array<i64: 16, 16>}, {pipeline_mode = #tpu.pipeline_mode<synchronous>, transform_indices = @transform_3, window_bounds = array<i64: 16, 16>}, {pipeline_mode = #tpu.pipeline_mode<synchronous>, transform_indices = @transform_4, window_bounds = array<i64: 32, 64>}, {pipeline_mode = #tpu.pipeline_mode<synchronous>, transform_indices = @transform_5, window_bounds = array<i64: 32, 32>}, {transform_indices = @transform_6, window_bounds = array<i64: 1, 16, 32>}]} {
    %c0 = arith.constant 0 : index
    %c0_0 = arith.constant 0 : index
    %0 = vector.load %arg3[%c0, %c0_0] : memref<16x16xf32, #tpu.memory_space<vmem>>, vector<16x16xf32>
    %c0_1 = arith.constant 0 : index
    %c0_2 = arith.constant 0 : index
    %1 = vector.load %arg4[%c0_1, %c0_2] : memref<16x16xf32, #tpu.memory_space<vmem>>, vector<16x16xf32>
    %c0_3 = arith.constant 0 : index
    %c0_4 = arith.constant 0 : index
    %2 = vector.load %arg5[%c0_3, %c0_4] : memref<32x64xf32, #tpu.memory_space<vmem>>, vector<32x64xf32>
    %c0_5 = arith.constant 0 : index
    %c0_6 = arith.constant 0 : index
    %3 = vector.load %arg6[%c0_5, %c0_6] : memref<32x32xf32, #tpu.memory_space<vmem>>, vector<32x32xf32>
    %cst = arith.constant 0.000000e+00 : f32
    %4 = vector.broadcast %cst : f32 to vector<16x32xf32>
    %c0_i32 = arith.constant 0 : i32
    %c0_7 = arith.constant 0 : index
    %5 = arith.index_cast %c0_i32 : i32 to index
    %c0_8 = arith.constant 0 : index
    %c0_9 = arith.constant 0 : index
    %6 = vector.load %arg1[%c0_7, %5, %c0_8, %c0_9] : memref<1x8x16x64xf32, #tpu.memory_space<vmem>>, vector<1x1x16x64xf32>
    %7 = vector.shape_cast %6 : vector<1x1x16x64xf32> to vector<16x64xf32>
    %c0_10 = arith.constant 0 : index
    %8 = arith.index_cast %c0_i32 : i32 to index
    %c0_11 = arith.constant 0 : index
    %c0_12 = arith.constant 0 : index
    %9 = vector.load %arg2[%c0_10, %8, %c0_11, %c0_12] : memref<1x8x16x32xf32, #tpu.memory_space<vmem>>, vector<1x1x16x32xf32>
    %10 = vector.shape_cast %9 : vector<1x1x16x32xf32> to vector<16x32xf32>
    %cst_13 = arith.constant dense<0.000000e+00> : vector<16x32xf32>
    %11 = tpu.matmul %0, %4, %cst_13 {dimension_numbers = #tpu.dot_dimension_numbers<[1], [0], [0], [1], [0, 0, 1, 1], [], []>} : vector<16x16xf32>, vector<16x32xf32>, vector<16x32xf32> -> vector<16x32xf32>
    %cst_14 = arith.constant dense<0.000000e+00> : vector<16x64xf32>
    %12 = tpu.matmul %11, %2, %cst_14 {dimension_numbers = #tpu.dot_dimension_numbers<[1], [0], [0], [1], [0, 0, 1, 1], [], []>} : vector<16x32xf32>, vector<32x64xf32>, vector<16x64xf32> -> vector<16x64xf32>
    %13 = arith.addf %7, %12 : vector<16x64xf32>
    %14 = arith.negf %13 : vector<16x64xf32>
    %15 = math.exp %14 : vector<16x64xf32>
    %cst_15 = arith.constant 1.000000e+00 : f32
    %16 = vector.broadcast %cst_15 : f32 to vector<16x64xf32>
    %17 = arith.addf %16, %15 : vector<16x64xf32>
    %18 = arith.divf %16, %17 : vector<16x64xf32>
    %19 = vector.extract_strided_slice %18 {offsets = [0, 0], sizes = [8, 32], strides = [1, 1]} : vector<16x64xf32> to vector<8x32xf32>
    %20 = vector.extract_strided_slice %18 {offsets = [0, 32], sizes = [8, 32], strides = [1, 1]} : vector<16x64xf32> to vector<8x32xf32>
    %21 = tpu.concatenate %19, %20 in 0 : vector<8x32xf32>, vector<8x32xf32> -> vector<16x32xf32>
    %22 = vector.extract_strided_slice %18 {offsets = [8, 0], sizes = [8, 32], strides = [1, 1]} : vector<16x64xf32> to vector<8x32xf32>
    %23 = vector.extract_strided_slice %18 {offsets = [8, 32], sizes = [8, 32], strides = [1, 1]} : vector<16x64xf32> to vector<8x32xf32>
    %24 = tpu.concatenate %22, %23 in 0 : vector<8x32xf32>, vector<8x32xf32> -> vector<16x32xf32>
    %25 = arith.mulf %21, %4 : vector<16x32xf32>
    %cst_16 = arith.constant dense<0.000000e+00> : vector<16x32xf32>
    %26 = tpu.matmul %1, %25, %cst_16 {dimension_numbers = #tpu.dot_dimension_numbers<[1], [0], [0], [1], [0, 0, 1, 1], [], []>} : vector<16x16xf32>, vector<16x32xf32>, vector<16x32xf32> -> vector<16x32xf32>
    %cst_17 = arith.constant dense<0.000000e+00> : vector<16x32xf32>
    %27 = tpu.matmul %26, %3, %cst_17 {dimension_numbers = #tpu.dot_dimension_numbers<[1], [0], [0], [1], [0, 0, 1, 1], [], []>} : vector<16x32xf32>, vector<32x32xf32>, vector<16x32xf32> -> vector<16x32xf32>
    %28 = arith.addf %10, %27 : vector<16x32xf32>
    %29 = math.tanh %28 : vector<16x32xf32>
    %30 = arith.mulf %24, %4 : vector<16x32xf32>
    %cst_18 = arith.constant 1.000000e+00 : f32
    %31 = vector.broadcast %cst_18 : f32 to vector<16x32xf32>
    %32 = arith.subf %31, %24 : vector<16x32xf32>
    %33 = arith.mulf %32, %29 : vector<16x32xf32>
    %34 = arith.addf %30, %33 : vector<16x32xf32>
    %c1_i32 = arith.constant 1 : i32
    %c0_19 = arith.constant 0 : index
    %35 = arith.index_cast %c1_i32 : i32 to index
    %c0_20 = arith.constant 0 : index
    %c0_21 = arith.constant 0 : index
    %36 = vector.load %arg1[%c0_19, %35, %c0_20, %c0_21] : memref<1x8x16x64xf32, #tpu.memory_space<vmem>>, vector<1x1x16x64xf32>
    %37 = vector.shape_cast %36 : vector<1x1x16x64xf32> to vector<16x64xf32>
    %c0_22 = arith.constant 0 : index
    %38 = arith.index_cast %c1_i32 : i32 to index
    %c0_23 = arith.constant 0 : index
    %c0_24 = arith.constant 0 : index
    %39 = vector.load %arg2[%c0_22, %38, %c0_23, %c0_24] : memref<1x8x16x32xf32, #tpu.memory_space<vmem>>, vector<1x1x16x32xf32>
    %40 = vector.shape_cast %39 : vector<1x1x16x32xf32> to vector<16x32xf32>
    %cst_25 = arith.constant dense<0.000000e+00> : vector<16x32xf32>
    %41 = tpu.matmul %0, %34, %cst_25 {dimension_numbers = #tpu.dot_dimension_numbers<[1], [0], [0], [1], [0, 0, 1, 1], [], []>} : vector<16x16xf32>, vector<16x32xf32>, vector<16x32xf32> -> vector<16x32xf32>
    %cst_26 = arith.constant dense<0.000000e+00> : vector<16x64xf32>
    %42 = tpu.matmul %41, %2, %cst_26 {dimension_numbers = #tpu.dot_dimension_numbers<[1], [0], [0], [1], [0, 0, 1, 1], [], []>} : vector<16x32xf32>, vector<32x64xf32>, vector<16x64xf32> -> vector<16x64xf32>
    %43 = arith.addf %37, %42 : vector<16x64xf32>
    %44 = arith.negf %43 : vector<16x64xf32>
    %45 = math.exp %44 : vector<16x64xf32>
    %cst_27 = arith.constant 1.000000e+00 : f32
    %46 = vector.broadcast %cst_27 : f32 to vector<16x64xf32>
    %47 = arith.addf %46, %45 : vector<16x64xf32>
    %48 = arith.divf %46, %47 : vector<16x64xf32>
    %49 = vector.extract_strided_slice %48 {offsets = [0, 0], sizes = [8, 32], strides = [1, 1]} : vector<16x64xf32> to vector<8x32xf32>
    %50 = vector.extract_strided_slice %48 {offsets = [0, 32], sizes = [8, 32], strides = [1, 1]} : vector<16x64xf32> to vector<8x32xf32>
    %51 = tpu.concatenate %49, %50 in 0 : vector<8x32xf32>, vector<8x32xf32> -> vector<16x32xf32>
    %52 = vector.extract_strided_slice %48 {offsets = [8, 0], sizes = [8, 32], strides = [1, 1]} : vector<16x64xf32> to vector<8x32xf32>
    %53 = vector.extract_strided_slice %48 {offsets = [8, 32], sizes = [8, 32], strides = [1, 1]} : vector<16x64xf32> to vector<8x32xf32>
    %54 = tpu.concatenate %52, %53 in 0 : vector<8x32xf32>, vector<8x32xf32> -> vector<16x32xf32>
    %55 = arith.mulf %51, %34 : vector<16x32xf32>
    %cst_28 = arith.constant dense<0.000000e+00> : vector<16x32xf32>
    %56 = tpu.matmul %1, %55, %cst_28 {dimension_numbers = #tpu.dot_dimension_numbers<[1], [0], [0], [1], [0, 0, 1, 1], [], []>} : vector<16x16xf32>, vector<16x32xf32>, vector<16x32xf32> -> vector<16x32xf32>
    %cst_29 = arith.constant dense<0.000000e+00> : vector<16x32xf32>
    %57 = tpu.matmul %56, %3, %cst_29 {dimension_numbers = #tpu.dot_dimension_numbers<[1], [0], [0], [1], [0, 0, 1, 1], [], []>} : vector<16x32xf32>, vector<32x32xf32>, vector<16x32xf32> -> vector<16x32xf32>
    %58 = arith.addf %40, %57 : vector<16x32xf32>
    %59 = math.tanh %58 : vector<16x32xf32>
    %60 = arith.mulf %54, %34 : vector<16x32xf32>
    %cst_30 = arith.constant 1.000000e+00 : f32
    %61 = vector.broadcast %cst_30 : f32 to vector<16x32xf32>
    %62 = arith.subf %61, %54 : vector<16x32xf32>
    %63 = arith.mulf %62, %59 : vector<16x32xf32>
    %64 = arith.addf %60, %63 : vector<16x32xf32>
    %c2_i32 = arith.constant 2 : i32
    %c0_31 = arith.constant 0 : index
    %65 = arith.index_cast %c2_i32 : i32 to index
    %c0_32 = arith.constant 0 : index
    %c0_33 = arith.constant 0 : index
    %66 = vector.load %arg1[%c0_31, %65, %c0_32, %c0_33] : memref<1x8x16x64xf32, #tpu.memory_space<vmem>>, vector<1x1x16x64xf32>
    %67 = vector.shape_cast %66 : vector<1x1x16x64xf32> to vector<16x64xf32>
    %c0_34 = arith.constant 0 : index
    %68 = arith.index_cast %c2_i32 : i32 to index
    %c0_35 = arith.constant 0 : index
    %c0_36 = arith.constant 0 : index
    %69 = vector.load %arg2[%c0_34, %68, %c0_35, %c0_36] : memref<1x8x16x32xf32, #tpu.memory_space<vmem>>, vector<1x1x16x32xf32>
    %70 = vector.shape_cast %69 : vector<1x1x16x32xf32> to vector<16x32xf32>
    %cst_37 = arith.constant dense<0.000000e+00> : vector<16x32xf32>
    %71 = tpu.matmul %0, %64, %cst_37 {dimension_numbers = #tpu.dot_dimension_numbers<[1], [0], [0], [1], [0, 0, 1, 1], [], []>} : vector<16x16xf32>, vector<16x32xf32>, vector<16x32xf32> -> vector<16x32xf32>
    %cst_38 = arith.constant dense<0.000000e+00> : vector<16x64xf32>
    %72 = tpu.matmul %71, %2, %cst_38 {dimension_numbers = #tpu.dot_dimension_numbers<[1], [0], [0], [1], [0, 0, 1, 1], [], []>} : vector<16x32xf32>, vector<32x64xf32>, vector<16x64xf32> -> vector<16x64xf32>
    %73 = arith.addf %67, %72 : vector<16x64xf32>
    %74 = arith.negf %73 : vector<16x64xf32>
    %75 = math.exp %74 : vector<16x64xf32>
    %cst_39 = arith.constant 1.000000e+00 : f32
    %76 = vector.broadcast %cst_39 : f32 to vector<16x64xf32>
    %77 = arith.addf %76, %75 : vector<16x64xf32>
    %78 = arith.divf %76, %77 : vector<16x64xf32>
    %79 = vector.extract_strided_slice %78 {offsets = [0, 0], sizes = [8, 32], strides = [1, 1]} : vector<16x64xf32> to vector<8x32xf32>
    %80 = vector.extract_strided_slice %78 {offsets = [0, 32], sizes = [8, 32], strides = [1, 1]} : vector<16x64xf32> to vector<8x32xf32>
    %81 = tpu.concatenate %79, %80 in 0 : vector<8x32xf32>, vector<8x32xf32> -> vector<16x32xf32>
    %82 = vector.extract_strided_slice %78 {offsets = [8, 0], sizes = [8, 32], strides = [1, 1]} : vector<16x64xf32> to vector<8x32xf32>
    %83 = vector.extract_strided_slice %78 {offsets = [8, 32], sizes = [8, 32], strides = [1, 1]} : vector<16x64xf32> to vector<8x32xf32>
    %84 = tpu.concatenate %82, %83 in 0 : vector<8x32xf32>, vector<8x32xf32> -> vector<16x32xf32>
    %85 = arith.mulf %81, %64 : vector<16x32xf32>
    %cst_40 = arith.constant dense<0.000000e+00> : vector<16x32xf32>
    %86 = tpu.matmul %1, %85, %cst_40 {dimension_numbers = #tpu.dot_dimension_numbers<[1], [0], [0], [1], [0, 0, 1, 1], [], []>} : vector<16x16xf32>, vector<16x32xf32>, vector<16x32xf32> -> vector<16x32xf32>
    %cst_41 = arith.constant dense<0.000000e+00> : vector<16x32xf32>
    %87 = tpu.matmul %86, %3, %cst_41 {dimension_numbers = #tpu.dot_dimension_numbers<[1], [0], [0], [1], [0, 0, 1, 1], [], []>} : vector<16x32xf32>, vector<32x32xf32>, vector<16x32xf32> -> vector<16x32xf32>
    %88 = arith.addf %70, %87 : vector<16x32xf32>
    %89 = math.tanh %88 : vector<16x32xf32>
    %90 = arith.mulf %84, %64 : vector<16x32xf32>
    %cst_42 = arith.constant 1.000000e+00 : f32
    %91 = vector.broadcast %cst_42 : f32 to vector<16x32xf32>
    %92 = arith.subf %91, %84 : vector<16x32xf32>
    %93 = arith.mulf %92, %89 : vector<16x32xf32>
    %94 = arith.addf %90, %93 : vector<16x32xf32>
    %c3_i32 = arith.constant 3 : i32
    %c0_43 = arith.constant 0 : index
    %95 = arith.index_cast %c3_i32 : i32 to index
    %c0_44 = arith.constant 0 : index
    %c0_45 = arith.constant 0 : index
    %96 = vector.load %arg1[%c0_43, %95, %c0_44, %c0_45] : memref<1x8x16x64xf32, #tpu.memory_space<vmem>>, vector<1x1x16x64xf32>
    %97 = vector.shape_cast %96 : vector<1x1x16x64xf32> to vector<16x64xf32>
    %c0_46 = arith.constant 0 : index
    %98 = arith.index_cast %c3_i32 : i32 to index
    %c0_47 = arith.constant 0 : index
    %c0_48 = arith.constant 0 : index
    %99 = vector.load %arg2[%c0_46, %98, %c0_47, %c0_48] : memref<1x8x16x32xf32, #tpu.memory_space<vmem>>, vector<1x1x16x32xf32>
    %100 = vector.shape_cast %99 : vector<1x1x16x32xf32> to vector<16x32xf32>
    %cst_49 = arith.constant dense<0.000000e+00> : vector<16x32xf32>
    %101 = tpu.matmul %0, %94, %cst_49 {dimension_numbers = #tpu.dot_dimension_numbers<[1], [0], [0], [1], [0, 0, 1, 1], [], []>} : vector<16x16xf32>, vector<16x32xf32>, vector<16x32xf32> -> vector<16x32xf32>
    %cst_50 = arith.constant dense<0.000000e+00> : vector<16x64xf32>
    %102 = tpu.matmul %101, %2, %cst_50 {dimension_numbers = #tpu.dot_dimension_numbers<[1], [0], [0], [1], [0, 0, 1, 1], [], []>} : vector<16x32xf32>, vector<32x64xf32>, vector<16x64xf32> -> vector<16x64xf32>
    %103 = arith.addf %97, %102 : vector<16x64xf32>
    %104 = arith.negf %103 : vector<16x64xf32>
    %105 = math.exp %104 : vector<16x64xf32>
    %cst_51 = arith.constant 1.000000e+00 : f32
    %106 = vector.broadcast %cst_51 : f32 to vector<16x64xf32>
    %107 = arith.addf %106, %105 : vector<16x64xf32>
    %108 = arith.divf %106, %107 : vector<16x64xf32>
    %109 = vector.extract_strided_slice %108 {offsets = [0, 0], sizes = [8, 32], strides = [1, 1]} : vector<16x64xf32> to vector<8x32xf32>
    %110 = vector.extract_strided_slice %108 {offsets = [0, 32], sizes = [8, 32], strides = [1, 1]} : vector<16x64xf32> to vector<8x32xf32>
    %111 = tpu.concatenate %109, %110 in 0 : vector<8x32xf32>, vector<8x32xf32> -> vector<16x32xf32>
    %112 = vector.extract_strided_slice %108 {offsets = [8, 0], sizes = [8, 32], strides = [1, 1]} : vector<16x64xf32> to vector<8x32xf32>
    %113 = vector.extract_strided_slice %108 {offsets = [8, 32], sizes = [8, 32], strides = [1, 1]} : vector<16x64xf32> to vector<8x32xf32>
    %114 = tpu.concatenate %112, %113 in 0 : vector<8x32xf32>, vector<8x32xf32> -> vector<16x32xf32>
    %115 = arith.mulf %111, %94 : vector<16x32xf32>
    %cst_52 = arith.constant dense<0.000000e+00> : vector<16x32xf32>
    %116 = tpu.matmul %1, %115, %cst_52 {dimension_numbers = #tpu.dot_dimension_numbers<[1], [0], [0], [1], [0, 0, 1, 1], [], []>} : vector<16x16xf32>, vector<16x32xf32>, vector<16x32xf32> -> vector<16x32xf32>
    %cst_53 = arith.constant dense<0.000000e+00> : vector<16x32xf32>
    %117 = tpu.matmul %116, %3, %cst_53 {dimension_numbers = #tpu.dot_dimension_numbers<[1], [0], [0], [1], [0, 0, 1, 1], [], []>} : vector<16x32xf32>, vector<32x32xf32>, vector<16x32xf32> -> vector<16x32xf32>
    %118 = arith.addf %100, %117 : vector<16x32xf32>
    %119 = math.tanh %118 : vector<16x32xf32>
    %120 = arith.mulf %114, %94 : vector<16x32xf32>
    %cst_54 = arith.constant 1.000000e+00 : f32
    %121 = vector.broadcast %cst_54 : f32 to vector<16x32xf32>
    %122 = arith.subf %121, %114 : vector<16x32xf32>
    %123 = arith.mulf %122, %119 : vector<16x32xf32>
    %124 = arith.addf %120, %123 : vector<16x32xf32>
    %c4_i32 = arith.constant 4 : i32
    %c0_55 = arith.constant 0 : index
    %125 = arith.index_cast %c4_i32 : i32 to index
    %c0_56 = arith.constant 0 : index
    %c0_57 = arith.constant 0 : index
    %126 = vector.load %arg1[%c0_55, %125, %c0_56, %c0_57] : memref<1x8x16x64xf32, #tpu.memory_space<vmem>>, vector<1x1x16x64xf32>
    %127 = vector.shape_cast %126 : vector<1x1x16x64xf32> to vector<16x64xf32>
    %c0_58 = arith.constant 0 : index
    %128 = arith.index_cast %c4_i32 : i32 to index
    %c0_59 = arith.constant 0 : index
    %c0_60 = arith.constant 0 : index
    %129 = vector.load %arg2[%c0_58, %128, %c0_59, %c0_60] : memref<1x8x16x32xf32, #tpu.memory_space<vmem>>, vector<1x1x16x32xf32>
    %130 = vector.shape_cast %129 : vector<1x1x16x32xf32> to vector<16x32xf32>
    %cst_61 = arith.constant dense<0.000000e+00> : vector<16x32xf32>
    %131 = tpu.matmul %0, %124, %cst_61 {dimension_numbers = #tpu.dot_dimension_numbers<[1], [0], [0], [1], [0, 0, 1, 1], [], []>} : vector<16x16xf32>, vector<16x32xf32>, vector<16x32xf32> -> vector<16x32xf32>
    %cst_62 = arith.constant dense<0.000000e+00> : vector<16x64xf32>
    %132 = tpu.matmul %131, %2, %cst_62 {dimension_numbers = #tpu.dot_dimension_numbers<[1], [0], [0], [1], [0, 0, 1, 1], [], []>} : vector<16x32xf32>, vector<32x64xf32>, vector<16x64xf32> -> vector<16x64xf32>
    %133 = arith.addf %127, %132 : vector<16x64xf32>
    %134 = arith.negf %133 : vector<16x64xf32>
    %135 = math.exp %134 : vector<16x64xf32>
    %cst_63 = arith.constant 1.000000e+00 : f32
    %136 = vector.broadcast %cst_63 : f32 to vector<16x64xf32>
    %137 = arith.addf %136, %135 : vector<16x64xf32>
    %138 = arith.divf %136, %137 : vector<16x64xf32>
    %139 = vector.extract_strided_slice %138 {offsets = [0, 0], sizes = [8, 32], strides = [1, 1]} : vector<16x64xf32> to vector<8x32xf32>
    %140 = vector.extract_strided_slice %138 {offsets = [0, 32], sizes = [8, 32], strides = [1, 1]} : vector<16x64xf32> to vector<8x32xf32>
    %141 = tpu.concatenate %139, %140 in 0 : vector<8x32xf32>, vector<8x32xf32> -> vector<16x32xf32>
    %142 = vector.extract_strided_slice %138 {offsets = [8, 0], sizes = [8, 32], strides = [1, 1]} : vector<16x64xf32> to vector<8x32xf32>
    %143 = vector.extract_strided_slice %138 {offsets = [8, 32], sizes = [8, 32], strides = [1, 1]} : vector<16x64xf32> to vector<8x32xf32>
    %144 = tpu.concatenate %142, %143 in 0 : vector<8x32xf32>, vector<8x32xf32> -> vector<16x32xf32>
    %145 = arith.mulf %141, %124 : vector<16x32xf32>
    %cst_64 = arith.constant dense<0.000000e+00> : vector<16x32xf32>
    %146 = tpu.matmul %1, %145, %cst_64 {dimension_numbers = #tpu.dot_dimension_numbers<[1], [0], [0], [1], [0, 0, 1, 1], [], []>} : vector<16x16xf32>, vector<16x32xf32>, vector<16x32xf32> -> vector<16x32xf32>
    %cst_65 = arith.constant dense<0.000000e+00> : vector<16x32xf32>
    %147 = tpu.matmul %146, %3, %cst_65 {dimension_numbers = #tpu.dot_dimension_numbers<[1], [0], [0], [1], [0, 0, 1, 1], [], []>} : vector<16x32xf32>, vector<32x32xf32>, vector<16x32xf32> -> vector<16x32xf32>
    %148 = arith.addf %130, %147 : vector<16x32xf32>
    %149 = math.tanh %148 : vector<16x32xf32>
    %150 = arith.mulf %144, %124 : vector<16x32xf32>
    %cst_66 = arith.constant 1.000000e+00 : f32
    %151 = vector.broadcast %cst_66 : f32 to vector<16x32xf32>
    %152 = arith.subf %151, %144 : vector<16x32xf32>
    %153 = arith.mulf %152, %149 : vector<16x32xf32>
    %154 = arith.addf %150, %153 : vector<16x32xf32>
    %c5_i32 = arith.constant 5 : i32
    %c0_67 = arith.constant 0 : index
    %155 = arith.index_cast %c5_i32 : i32 to index
    %c0_68 = arith.constant 0 : index
    %c0_69 = arith.constant 0 : index
    %156 = vector.load %arg1[%c0_67, %155, %c0_68, %c0_69] : memref<1x8x16x64xf32, #tpu.memory_space<vmem>>, vector<1x1x16x64xf32>
    %157 = vector.shape_cast %156 : vector<1x1x16x64xf32> to vector<16x64xf32>
    %c0_70 = arith.constant 0 : index
    %158 = arith.index_cast %c5_i32 : i32 to index
    %c0_71 = arith.constant 0 : index
    %c0_72 = arith.constant 0 : index
    %159 = vector.load %arg2[%c0_70, %158, %c0_71, %c0_72] : memref<1x8x16x32xf32, #tpu.memory_space<vmem>>, vector<1x1x16x32xf32>
    %160 = vector.shape_cast %159 : vector<1x1x16x32xf32> to vector<16x32xf32>
    %cst_73 = arith.constant dense<0.000000e+00> : vector<16x32xf32>
    %161 = tpu.matmul %0, %154, %cst_73 {dimension_numbers = #tpu.dot_dimension_numbers<[1], [0], [0], [1], [0, 0, 1, 1], [], []>} : vector<16x16xf32>, vector<16x32xf32>, vector<16x32xf32> -> vector<16x32xf32>
    %cst_74 = arith.constant dense<0.000000e+00> : vector<16x64xf32>
    %162 = tpu.matmul %161, %2, %cst_74 {dimension_numbers = #tpu.dot_dimension_numbers<[1], [0], [0], [1], [0, 0, 1, 1], [], []>} : vector<16x32xf32>, vector<32x64xf32>, vector<16x64xf32> -> vector<16x64xf32>
    %163 = arith.addf %157, %162 : vector<16x64xf32>
    %164 = arith.negf %163 : vector<16x64xf32>
    %165 = math.exp %164 : vector<16x64xf32>
    %cst_75 = arith.constant 1.000000e+00 : f32
    %166 = vector.broadcast %cst_75 : f32 to vector<16x64xf32>
    %167 = arith.addf %166, %165 : vector<16x64xf32>
    %168 = arith.divf %166, %167 : vector<16x64xf32>
    %169 = vector.extract_strided_slice %168 {offsets = [0, 0], sizes = [8, 32], strides = [1, 1]} : vector<16x64xf32> to vector<8x32xf32>
    %170 = vector.extract_strided_slice %168 {offsets = [0, 32], sizes = [8, 32], strides = [1, 1]} : vector<16x64xf32> to vector<8x32xf32>
    %171 = tpu.concatenate %169, %170 in 0 : vector<8x32xf32>, vector<8x32xf32> -> vector<16x32xf32>
    %172 = vector.extract_strided_slice %168 {offsets = [8, 0], sizes = [8, 32], strides = [1, 1]} : vector<16x64xf32> to vector<8x32xf32>
    %173 = vector.extract_strided_slice %168 {offsets = [8, 32], sizes = [8, 32], strides = [1, 1]} : vector<16x64xf32> to vector<8x32xf32>
    %174 = tpu.concatenate %172, %173 in 0 : vector<8x32xf32>, vector<8x32xf32> -> vector<16x32xf32>
    %175 = arith.mulf %171, %154 : vector<16x32xf32>
    %cst_76 = arith.constant dense<0.000000e+00> : vector<16x32xf32>
    %176 = tpu.matmul %1, %175, %cst_76 {dimension_numbers = #tpu.dot_dimension_numbers<[1], [0], [0], [1], [0, 0, 1, 1], [], []>} : vector<16x16xf32>, vector<16x32xf32>, vector<16x32xf32> -> vector<16x32xf32>
    %cst_77 = arith.constant dense<0.000000e+00> : vector<16x32xf32>
    %177 = tpu.matmul %176, %3, %cst_77 {dimension_numbers = #tpu.dot_dimension_numbers<[1], [0], [0], [1], [0, 0, 1, 1], [], []>} : vector<16x32xf32>, vector<32x32xf32>, vector<16x32xf32> -> vector<16x32xf32>
    %178 = arith.addf %160, %177 : vector<16x32xf32>
    %179 = math.tanh %178 : vector<16x32xf32>
    %180 = arith.mulf %174, %154 : vector<16x32xf32>
    %cst_78 = arith.constant 1.000000e+00 : f32
    %181 = vector.broadcast %cst_78 : f32 to vector<16x32xf32>
    %182 = arith.subf %181, %174 : vector<16x32xf32>
    %183 = arith.mulf %182, %179 : vector<16x32xf32>
    %184 = arith.addf %180, %183 : vector<16x32xf32>
    %c6_i32 = arith.constant 6 : i32
    %c0_79 = arith.constant 0 : index
    %185 = arith.index_cast %c6_i32 : i32 to index
    %c0_80 = arith.constant 0 : index
    %c0_81 = arith.constant 0 : index
    %186 = vector.load %arg1[%c0_79, %185, %c0_80, %c0_81] : memref<1x8x16x64xf32, #tpu.memory_space<vmem>>, vector<1x1x16x64xf32>
    %187 = vector.shape_cast %186 : vector<1x1x16x64xf32> to vector<16x64xf32>
    %c0_82 = arith.constant 0 : index
    %188 = arith.index_cast %c6_i32 : i32 to index
    %c0_83 = arith.constant 0 : index
    %c0_84 = arith.constant 0 : index
    %189 = vector.load %arg2[%c0_82, %188, %c0_83, %c0_84] : memref<1x8x16x32xf32, #tpu.memory_space<vmem>>, vector<1x1x16x32xf32>
    %190 = vector.shape_cast %189 : vector<1x1x16x32xf32> to vector<16x32xf32>
    %cst_85 = arith.constant dense<0.000000e+00> : vector<16x32xf32>
    %191 = tpu.matmul %0, %184, %cst_85 {dimension_numbers = #tpu.dot_dimension_numbers<[1], [0], [0], [1], [0, 0, 1, 1], [], []>} : vector<16x16xf32>, vector<16x32xf32>, vector<16x32xf32> -> vector<16x32xf32>
    %cst_86 = arith.constant dense<0.000000e+00> : vector<16x64xf32>
    %192 = tpu.matmul %191, %2, %cst_86 {dimension_numbers = #tpu.dot_dimension_numbers<[1], [0], [0], [1], [0, 0, 1, 1], [], []>} : vector<16x32xf32>, vector<32x64xf32>, vector<16x64xf32> -> vector<16x64xf32>
    %193 = arith.addf %187, %192 : vector<16x64xf32>
    %194 = arith.negf %193 : vector<16x64xf32>
    %195 = math.exp %194 : vector<16x64xf32>
    %cst_87 = arith.constant 1.000000e+00 : f32
    %196 = vector.broadcast %cst_87 : f32 to vector<16x64xf32>
    %197 = arith.addf %196, %195 : vector<16x64xf32>
    %198 = arith.divf %196, %197 : vector<16x64xf32>
    %199 = vector.extract_strided_slice %198 {offsets = [0, 0], sizes = [8, 32], strides = [1, 1]} : vector<16x64xf32> to vector<8x32xf32>
    %200 = vector.extract_strided_slice %198 {offsets = [0, 32], sizes = [8, 32], strides = [1, 1]} : vector<16x64xf32> to vector<8x32xf32>
    %201 = tpu.concatenate %199, %200 in 0 : vector<8x32xf32>, vector<8x32xf32> -> vector<16x32xf32>
    %202 = vector.extract_strided_slice %198 {offsets = [8, 0], sizes = [8, 32], strides = [1, 1]} : vector<16x64xf32> to vector<8x32xf32>
    %203 = vector.extract_strided_slice %198 {offsets = [8, 32], sizes = [8, 32], strides = [1, 1]} : vector<16x64xf32> to vector<8x32xf32>
    %204 = tpu.concatenate %202, %203 in 0 : vector<8x32xf32>, vector<8x32xf32> -> vector<16x32xf32>
    %205 = arith.mulf %201, %184 : vector<16x32xf32>
    %cst_88 = arith.constant dense<0.000000e+00> : vector<16x32xf32>
    %206 = tpu.matmul %1, %205, %cst_88 {dimension_numbers = #tpu.dot_dimension_numbers<[1], [0], [0], [1], [0, 0, 1, 1], [], []>} : vector<16x16xf32>, vector<16x32xf32>, vector<16x32xf32> -> vector<16x32xf32>
    %cst_89 = arith.constant dense<0.000000e+00> : vector<16x32xf32>
    %207 = tpu.matmul %206, %3, %cst_89 {dimension_numbers = #tpu.dot_dimension_numbers<[1], [0], [0], [1], [0, 0, 1, 1], [], []>} : vector<16x32xf32>, vector<32x32xf32>, vector<16x32xf32> -> vector<16x32xf32>
    %208 = arith.addf %190, %207 : vector<16x32xf32>
    %209 = math.tanh %208 : vector<16x32xf32>
    %210 = arith.mulf %204, %184 : vector<16x32xf32>
    %cst_90 = arith.constant 1.000000e+00 : f32
    %211 = vector.broadcast %cst_90 : f32 to vector<16x32xf32>
    %212 = arith.subf %211, %204 : vector<16x32xf32>
    %213 = arith.mulf %212, %209 : vector<16x32xf32>
    %214 = arith.addf %210, %213 : vector<16x32xf32>
    %c7_i32 = arith.constant 7 : i32
    %c0_91 = arith.constant 0 : index
    %215 = arith.index_cast %c7_i32 : i32 to index
    %c0_92 = arith.constant 0 : index
    %c0_93 = arith.constant 0 : index
    %216 = vector.load %arg1[%c0_91, %215, %c0_92, %c0_93] : memref<1x8x16x64xf32, #tpu.memory_space<vmem>>, vector<1x1x16x64xf32>
    %217 = vector.shape_cast %216 : vector<1x1x16x64xf32> to vector<16x64xf32>
    %c0_94 = arith.constant 0 : index
    %218 = arith.index_cast %c7_i32 : i32 to index
    %c0_95 = arith.constant 0 : index
    %c0_96 = arith.constant 0 : index
    %219 = vector.load %arg2[%c0_94, %218, %c0_95, %c0_96] : memref<1x8x16x32xf32, #tpu.memory_space<vmem>>, vector<1x1x16x32xf32>
    %220 = vector.shape_cast %219 : vector<1x1x16x32xf32> to vector<16x32xf32>
    %cst_97 = arith.constant dense<0.000000e+00> : vector<16x32xf32>
    %221 = tpu.matmul %0, %214, %cst_97 {dimension_numbers = #tpu.dot_dimension_numbers<[1], [0], [0], [1], [0, 0, 1, 1], [], []>} : vector<16x16xf32>, vector<16x32xf32>, vector<16x32xf32> -> vector<16x32xf32>
    %cst_98 = arith.constant dense<0.000000e+00> : vector<16x64xf32>
    %222 = tpu.matmul %221, %2, %cst_98 {dimension_numbers = #tpu.dot_dimension_numbers<[1], [0], [0], [1], [0, 0, 1, 1], [], []>} : vector<16x32xf32>, vector<32x64xf32>, vector<16x64xf32> -> vector<16x64xf32>
    %223 = arith.addf %217, %222 : vector<16x64xf32>
    %224 = arith.negf %223 : vector<16x64xf32>
    %225 = math.exp %224 : vector<16x64xf32>
    %cst_99 = arith.constant 1.000000e+00 : f32
    %226 = vector.broadcast %cst_99 : f32 to vector<16x64xf32>
    %227 = arith.addf %226, %225 : vector<16x64xf32>
    %228 = arith.divf %226, %227 : vector<16x64xf32>
    %229 = vector.extract_strided_slice %228 {offsets = [0, 0], sizes = [8, 32], strides = [1, 1]} : vector<16x64xf32> to vector<8x32xf32>
    %230 = vector.extract_strided_slice %228 {offsets = [0, 32], sizes = [8, 32], strides = [1, 1]} : vector<16x64xf32> to vector<8x32xf32>
    %231 = tpu.concatenate %229, %230 in 0 : vector<8x32xf32>, vector<8x32xf32> -> vector<16x32xf32>
    %232 = vector.extract_strided_slice %228 {offsets = [8, 0], sizes = [8, 32], strides = [1, 1]} : vector<16x64xf32> to vector<8x32xf32>
    %233 = vector.extract_strided_slice %228 {offsets = [8, 32], sizes = [8, 32], strides = [1, 1]} : vector<16x64xf32> to vector<8x32xf32>
    %234 = tpu.concatenate %232, %233 in 0 : vector<8x32xf32>, vector<8x32xf32> -> vector<16x32xf32>
    %235 = arith.mulf %231, %214 : vector<16x32xf32>
    %cst_100 = arith.constant dense<0.000000e+00> : vector<16x32xf32>
    %236 = tpu.matmul %1, %235, %cst_100 {dimension_numbers = #tpu.dot_dimension_numbers<[1], [0], [0], [1], [0, 0, 1, 1], [], []>} : vector<16x16xf32>, vector<16x32xf32>, vector<16x32xf32> -> vector<16x32xf32>
    %cst_101 = arith.constant dense<0.000000e+00> : vector<16x32xf32>
    %237 = tpu.matmul %236, %3, %cst_101 {dimension_numbers = #tpu.dot_dimension_numbers<[1], [0], [0], [1], [0, 0, 1, 1], [], []>} : vector<16x32xf32>, vector<32x32xf32>, vector<16x32xf32> -> vector<16x32xf32>
    %238 = arith.addf %220, %237 : vector<16x32xf32>
    %239 = math.tanh %238 : vector<16x32xf32>
    %240 = arith.mulf %234, %214 : vector<16x32xf32>
    %cst_102 = arith.constant 1.000000e+00 : f32
    %241 = vector.broadcast %cst_102 : f32 to vector<16x32xf32>
    %242 = arith.subf %241, %234 : vector<16x32xf32>
    %243 = arith.mulf %242, %239 : vector<16x32xf32>
    %244 = arith.addf %240, %243 : vector<16x32xf32>
    %c8_i32 = arith.constant 8 : i32
    %c0_103 = arith.constant 0 : index
    %c0_104 = arith.constant 0 : index
    %c0_105 = arith.constant 0 : index
    %245 = vector.load %arg7[%c0_103, %c0_104, %c0_105] : memref<1x16x32xf32, #tpu.memory_space<vmem>>, vector<1x16x32xf32>
    %246 = vector.shape_cast %245 : vector<1x16x32xf32> to vector<16x32xf32>
    %247 = vector.shape_cast %244 : vector<16x32xf32> to vector<1x16x32xf32>
    tpu.vector_store %arg7[%c0_103, %c0_104, %c0_105], %247 {strides = array<i32>} : memref<1x16x32xf32, #tpu.memory_space<vmem>>, vector<1x16x32xf32>,
    return
  }
  func.func @transform_0(%arg0: i32) -> (i32, i32, i32, i32) {
    %c0_i32 = arith.constant 0 : i32
    %c0_i32_0 = arith.constant 0 : i32
    %c0_i32_1 = arith.constant 0 : i32
    %c0_i32_2 = arith.constant 0 : i32
    return %arg0, %c0_i32, %c0_i32_0, %c0_i32_1 : i32, i32, i32, i32
  }
  func.func @transform_1(%arg0: i32) -> (i32, i32, i32, i32) {
    %c0_i32 = arith.constant 0 : i32
    %c0_i32_0 = arith.constant 0 : i32
    %c0_i32_1 = arith.constant 0 : i32
    %c0_i32_2 = arith.constant 0 : i32
    return %arg0, %c0_i32, %c0_i32_0, %c0_i32_1 : i32, i32, i32, i32
  }
  func.func @transform_2(%arg0: i32) -> (i32, i32) {
    %c0_i32 = arith.constant 0 : i32
    %c0_i32_0 = arith.constant 0 : i32
    %c0_i32_1 = arith.constant 0 : i32
    return %c0_i32, %c0_i32_0 : i32, i32
  }
  func.func @transform_3(%arg0: i32) -> (i32, i32) {
    %c0_i32 = arith.constant 0 : i32
    %c0_i32_0 = arith.constant 0 : i32
    %c0_i32_1 = arith.constant 0 : i32
    return %c0_i32, %c0_i32_0 : i32, i32
  }
  func.func @transform_4(%arg0: i32) -> (i32, i32) {
    %c0_i32 = arith.constant 0 : i32
    %c0_i32_0 = arith.constant 0 : i32
    %c0_i32_1 = arith.constant 0 : i32
    return %c0_i32, %c0_i32_0 : i32, i32
  }
  func.func @transform_5(%arg0: i32) -> (i32, i32) {
    %c0_i32 = arith.constant 0 : i32
    %c0_i32_0 = arith.constant 0 : i32
    %c0_i32_1 = arith.constant 0 : i32
    return %c0_i32, %c0_i32_0 : i32, i32
  }
  func.func @transform_6(%arg0: i32) -> (i32, i32, i32) {
    %c0_i32 = arith.constant 0 : i32
    %c0_i32_0 = arith.constant 0 : i32
    %c0_i32_1 = arith.constant 0 : i32
    return %arg0, %c0_i32, %c0_i32_0 : i32, i32, i32
  }
}

</mosaic_0001>

<bundles_post_ra>
// kernel: tpu_custom_call.1
= control target key start
LH: loop header
LB: loop body
LE: loop exit
PB: predicated region body
PF: predicated region fallthrough
CT: control target
= control target key end

     0   :  { %s5093_s0 = inlined_call_operand.hbm [shape: f32[2,8,16,64], index: 0, kind: input, shape index: {}]   ;;  %s5094_s1 = inlined_call_operand.hbm [shape: f32[2,8,16,32], index: 1, kind: input, shape index: {}]   ;;  %s5095_s2 = inlined_call_operand.hbm [shape: f32[16,16], index: 2, kind: input, shape index: {}]   ;;  %s5096_s3 = inlined_call_operand.hbm [shape: f32[16,16], index: 3, kind: input, shape index: {}]   ;;  %s5097_s4 = inlined_call_operand.hbm [shape: f32[32,64], index: 4, kind: input, shape index: {}]   ;;  %s5098_s5 = inlined_call_operand.hbm [shape: f32[32,32], index: 5, kind: input, shape index: {}]   ;;  %s5099_s6 = inlined_call_operand.hbm [shape: f32[2,16,32], index: 6, kind: output, shape index: {}]  }
   0x1   :  { %5107 = sst [smem:[#allocation20_spill]] %s5093_s0 }
   0x2   :  { %5108 = sst [smem:[#allocation21_spill]] %s5095_s2 }
   0x3   :  { %5109 = sst [smem:[#allocation22_spill]] %s5096_s3 }
   0x4   :  { %11 = vsyncpa [#allocation3], 0 }
   0x5   :  { %13 = vsyncpa [#allocation3 + $0x1], 0 }
   0x6   :  { %14 = vsyncpa [#allocation6], 0 }
   0x7   :  { %16 = vsyncpa [#allocation6 + $0x1], 0 }
   0x8   :  { %17 = vsyncpa [#allocation9], 0 }
   0x9   :  { %18 = vsyncpa [#allocation12], 0 }
   0xa   :  { %19 = vsyncpa [#allocation4], 0 }
   0xb   :  { %21 = vsyncpa [#allocation4 + $0x1], 0  ;;  %s4450_s21 = smov 0   ;;  %s4452_s22 = smov 0  }
   0xc   :  { %s4454_s23 = smov 0   ;;  %s4456_s24 = smov 0  }
   0xd LB: > { %s4471_s25 = sadd.s32 4294967295, %s4400_s24   ;;  %s3374_s26 = sadd.s32 4294967294, %s4400_s24   ;;  %s4400_s24 = sphi %s4456_s24, %s5134_s24   ;;  %s4396_s23 = sphi %s4454_s23, %s5133_s23   ;;  %s4392_s22 = sphi %s4452_s22, %s5132_s22   ;;  %s4388_s21 = sphi %s4450_s21, %s5131_s21  }
   0xe   : > { %p47_p0 = scmp.ne.s32.totalorder %s4392_s22, %s4388_s21  ;;  %p5100_p1 = scmp.eq.s32.totalorder %s4471_s25, 0 }
   0xf   : > { %p181_p2 = scmp.eq.s32.totalorder %s4471_s25, 1  ;;  %p187_p3 = scmp.eq.s32.totalorder %s3374_s26, 1 }
  0x10   : > { %p4480_p4 = por %p5100_p1, %p47_p0  ;;  %p3375_p5 = scmp.ge.s32.totalorder %s4400_s24, 1 }
  0x11   : > { %p4485_p6 = por %p187_p3, %p47_p0  ;;  %p194_p7 = scmp.lt.s32.totalorder %s4400_s24, 3 }
  0x12   : > { %s5110_s27 = scalar_select %p4480_p4, 1, 0 }
  0x13   : > { %s5111_s28 = scalar_select %p4485_p6, 1, 0 }
  0x14   : > { %p4490_p8 = pnand %p3375_p5, %p194_p7  ;;  %s4402_s30 = smov [#allocation7]  }
  0x15   : > { %s206_s7 = sshll.u32 %s4402_s30, 4  ;;  %s4403_s9 = smov [#allocation8]   ;;  %s207_s7 = int_to_ptr.vmem [resolvable:$true] %s206_s7 }
  0x16   : > { %p3978_p9 = pneg %p4490_p8  ;;  %s219_s10 = sshll.u32 %s4403_s9, 4  ;;  %s220_s10 = int_to_ptr.vmem [resolvable:$true] %s219_s10 }
  0x17   : > { %s4404_s11 = smov [#allocation10]   ;;  %s4171_s13 = scalar_lea.vmem %s207_s7, 256 }
  0x18   : > { %p4499_p11 = pnand %p3978_p9, %p5100_p1  ;;  %s232_s12 = sshll.u32 %s4404_s11, 4  ;;  %s233_s12 = int_to_ptr.vmem [resolvable:$true] %s232_s12 }
  0x19   : > { %p4172_p13 = scmp.ne.s32.totalorder %s207_s7, %s4171_s13  ;;  %p4179_p5 = scmp.lt.s32.totalorder %s207_s7, %s207_s7 }
  0x1a   : > { %p4162_p12 = pneg %p4499_p11  ;;  %p4180_p7 = scmp.lt.s32.totalorder %s4171_s13, %s4171_s13 }
  0x1c   : > { %p4174_p0 = pnand %p4172_p13, %p4162_p12  ;;  %p4181_p9 = por %p4180_p7, %p4179_p5 }
  0x1e   : > { %p4175_p3 = pneg %p4174_p0 }
  0x20   : > { %p4182_p10 = pnand %p4181_p9, %p4175_p3 }
  0x22   : > { %4185 = shalt.err (!%p4182_p10)
}
  0x23   : > { %s5101_s14 = smov 128   ;;  %s5103_s15 = smov 8  }
  0x24   : > { %s5114_s2 = sld [smem:[#allocation21_spill]]  ;;  %s4197_s18 = scalar_lea.vmem %s220_s10, 256 }
  0x25   : > { %p4198_p13 = scmp.ne.s32.totalorder %s220_s10, %s4197_s18  ;;  %p4205_p3 = scmp.lt.s32.totalorder %s220_s10, %s220_s10 }
  0x26   : > { %p4206_p10 = scmp.lt.s32.totalorder %s4197_s18, %s4197_s18 }
  0x27   : > { %p4200_p0 = pnand %p4198_p13, %p4162_p12 }
  0x28   : > { %p4207_p7 = por %p4206_p10, %p4205_p3 }
  0x29   : > { %p4201_p5 = pneg %p4200_p0 }
  0x2a   : > { %3981 = dma.hbm_to_vmem [thread:$0]  (!%p4499_p11), %s5114_s2, 256, %s207_s7, [#allocation6], %s5101_s14, %s5101_s14, %s5103_s15  }
  0x2b   : > { %p4208_p9 = pnand %p4207_p7, %p4201_p5 }
  0x2d   : > { %4211 = shalt.err (!%p4208_p9)
}
  0x2e   : > { %s5115_s3 = sld [smem:[#allocation22_spill]]  ;;  %s4223_s26 = scalar_lea.vmem %s233_s12, 512 }
  0x2f   : > { %p4224_p1 = scmp.ne.s32.totalorder %s233_s12, %s4223_s26  ;;  %p4231_p3 = scmp.lt.s32.totalorder %s233_s12, %s233_s12 }
  0x30   : > { %p4232_p5 = scmp.lt.s32.totalorder %s4223_s26, %s4223_s26 }
  0x31   : > { %p4226_p13 = pnand %p4224_p1, %p4162_p12 }
  0x32   : > { %p4233_p10 = por %p4232_p5, %p4231_p3 }
  0x33   : > { %p4227_p0 = pneg %p4226_p13 }
  0x34   : > { %3984 = dma.hbm_to_vmem [thread:$0]  (!%p4499_p11), %s5115_s3, 256, %s220_s10, [#allocation9], %s5101_s14, %s5101_s14, %s5103_s15  }
  0x35   : > { %p4234_p7 = pnand %p4233_p10, %p4227_p0 }
  0x37   : > { %4237 = shalt.err (!%p4234_p7)
}
  0x38   : > { %3987 = dma.hbm_to_vmem [thread:$0]  (!%p4499_p11), %s5097_s4, 512, %s233_s12, [#allocation9], %s5101_s14, %s5101_s14, %s5103_s15  }
  0x39   : > { %s4407_s9 = smov [#allocation11]  }
  0x3a   : > { %s245_s10 = sshll.u32 %s4407_s9, 4  ;;  %s246_s10 = int_to_ptr.vmem [resolvable:$true] %s245_s10 }
  0x3b   : > { %s4249_s11 = scalar_lea.vmem %s246_s10, 512  ;;  %p4257_p0 = scmp.lt.s32.totalorder %s246_s10, %s246_s10 }
  0x3c   : > { %p4250_p1 = scmp.ne.s32.totalorder %s246_s10, %s4249_s11  ;;  %p4258_p3 = scmp.lt.s32.totalorder %s4249_s11, %s4249_s11 }
  0x3e   : > { %p4252_p9 = pnand %p4250_p1, %p4162_p12  ;;  %p4259_p5 = por %p4258_p3, %p4257_p0 }
  0x40   : > { %p4253_p13 = pneg %p4252_p9 }
  0x42   : > { %p4260_p10 = pnand %p4259_p5, %p4253_p13 }
  0x44   : > { %4263 = shalt.err (!%p4260_p10)
}
  0x45   : > { %3990 = dma.hbm_to_vmem [thread:$0]  (!%p4499_p11), %s5098_s5, 512, %s246_s10, [#allocation12], %s5101_s14, %s5101_s14, %s5103_s15  }
  0x46   : > { %s4550_s16 = sadd.s32 1, %s4400_s24   ;;  %s34_s8 = sadd.s32 1, %s4396_s23 }
  0x47   : > { %s31_s17 = ssub.s32 %s4400_s24, %s4550_s16  ;;  %p41_p12 = scmp.ne.s32.totalorder %s4396_s23, %s4392_s22 }
  0x48   : > { %p32_p7 = scmp.eq.s32.totalorder %s31_s17, 0  ;;  %p42_p1 = scmp.eq.s32.totalorder %s4400_s24, 0 }
  0x49   : > { %p4560_p9 = por %p181_p2, %p41_p12  ;;  %p4006_p13 = scmp.lt.s32.totalorder %s4400_s24, 2 }
  0x4a   : > { %s4566_s19 = scalar_select %p32_p7, %s4396_s23, %s34_s8  }
  0x4b   : > { %s5116_s18 = scalar_select %p4560_p9, 1, 0 }
  0x4c   : > { %p43_p0 = por %p42_p1, %p41_p12  ;;  %s259_s20 = sand.u32 1, %s4396_s23  }
  0x4d   : > { %s3381_s26 = sshll.u32 %s259_s20, 7  ;;  %s3508_s30 = sshll.u32 %s4400_s24, 11 }
  0x4e   : > { %s5117_s0 = sld [smem:[#allocation20_spill]]  ;;  %s263_s11 = scalar_lea.vmem [#allocation2], %s3381_s26 }
  0x4f   : > { %s270_s12 = sshll.u32 %s263_s11, 4  ;;  %p4577_p2 = pnand %p4006_p13, %p43_p0  ;;  %s4575_s12 = int_to_ptr.vmem [resolvable:$true] %s270_s12 }
  0x50   : > { %s4584_s14 = scalar_lea.hbm %s5094_s1, %s3508_s30  ;;  %s284_s7 = scalar_lea.vmem [#allocation5], %s3381_s26 }
  0x51   : > { %s4586_s9 = sshll.u32 %s284_s7, 4  ;;  %s4588_s15 = scalar_lea.sflag [#allocation3], %s259_s20  ;;  %s4619_s9 = int_to_ptr.vmem [resolvable:$true] %s4586_s9 }
  0x52   : > { %p4266_p3 = pneg %p4577_p2 }
  0x54   : > { %s4573_s10 = scalar_lea.hbm %s5117_s0, %s3508_s30  ;;  %s4269_s8 = scalar_lea.hbm %s5117_s0, 4096 }
  0x55   : > { %s4264_s2 = scalar_lea.hbm %s4573_s10, 2048  ;;  %p4270_p12 = scmp.lt.s32.totalorder %s4573_s10, %s5117_s0 }
  0x56   : > { %p4265_p11 = scmp.ne.s32.totalorder %s4573_s10, %s4264_s2  ;;  %p4271_p7 = scmp.lt.s32.totalorder %s4269_s8, %s4264_s2 }
  0x58   : > { %p4267_p5 = pnand %p4266_p3, %p4265_p11  ;;  %p4272_p1 = por %p4271_p7, %p4270_p12 }
  0x5a   : > { %p4268_p10 = pneg %p4267_p5 }
  0x5c   : > { %p4273_p13 = pnand %p4272_p1, %p4268_p10 }
  0x5e   : > { %4276 = shalt.err (!%p4273_p13)
}
  0x5f   : > { %s4277_s20 = scalar_lea.vmem %s4575_s12, 2048  ;;  %s4408_s3 = smov [#allocation2]  }
  0x60   : > { %p4278_p0 = scmp.ne.s32.totalorder %s4575_s12, %s4277_s20  ;;  %s4282_s26 = sshll.u32 %s4408_s3, 4  ;;  %s4283_s26 = int_to_ptr.vmem [resolvable:$false] %s4282_s26 }
  0x61   : > { %s4284_s7 = scalar_lea.vmem %s4283_s26, 4096  ;;  %p4285_p6 = scmp.lt.s32.totalorder %s4575_s12, %s4283_s26 }
  0x62   : > { %p4280_p11 = pnand %p4278_p0, %p4266_p3  ;;  %p4286_p9 = scmp.lt.s32.totalorder %s4284_s7, %s4277_s20 }
  0x64   : > { %p4281_p5 = pneg %p4280_p11  ;;  %p4287_p4 = por %p4286_p9, %p4285_p6 }
  0x66   : > { %p4288_p12 = pnand %p4287_p4, %p4281_p5 }
  0x68   : > { %4291 = shalt.err (!%p4288_p12)
}
  0x69   : > { %s5119_s2 = smov 8   ;;  %s5120_s11 = smov 128  }
  0x6a   : > { %3994 = dma.hbm_to_vmem [thread:$0]  (!%p4577_p2), %s4573_s10, 2048, %s4575_s12, %s4588_s15, %s5120_s11, %s5120_s11, %s5119_s2  }
  0x6b   : > { %s280_s8 = sand.u32 1, %s4400_s24   ;;  %s4292_s30 = scalar_lea.hbm %s4584_s14, 2048 }
  0x6c   : > { %s281_s17 = scalar_lea.sflag [#allocation6], %s280_s8  ;;  %p4293_p4 = scmp.ne.s32.totalorder %s4584_s14, %s4292_s30 }
  0x6d   : > { %s4297_s26 = scalar_lea.hbm %s5094_s1, 4096  ;;  %p4298_p10 = scmp.lt.s32.totalorder %s4584_s14, %s5094_s1 }
  0x6e   : > { %p4295_p6 = pnand %p4293_p4, %p4266_p3  ;;  %p4299_p7 = scmp.lt.s32.totalorder %s4297_s26, %s4292_s30 }
  0x70   : > { %p4296_p9 = pneg %p4295_p6  ;;  %p4300_p1 = por %p4299_p7, %p4298_p10 }
  0x72   : > { %p4301_p13 = pnand %p4300_p1, %p4296_p9 }
  0x74   : > { %4304 = shalt.err (!%p4301_p13)
}
  0x75   : > { %s4305_s15 = scalar_lea.vmem %s4619_s9, 2048  ;;  %s4409_s10 = smov [#allocation5]  }
  0x76   : > { %p4306_p0 = scmp.ne.s32.totalorder %s4619_s9, %s4305_s15  ;;  %s4310_s12 = sshll.u32 %s4409_s10, 4  ;;  %s4311_s12 = int_to_ptr.vmem [resolvable:$false] %s4310_s12 }
  0x77   : > { %s4312_s8 = scalar_lea.vmem %s4311_s12, 4096  ;;  %p4313_p12 = scmp.lt.s32.totalorder %s4619_s9, %s4311_s12 }
  0x78   : > { %p4308_p11 = pnand %p4306_p0, %p4266_p3  ;;  %p4314_p4 = scmp.lt.s32.totalorder %s4312_s8, %s4305_s15 }
  0x7a   : > { %p4309_p5 = pneg %p4308_p11  ;;  %p4315_p6 = por %p4314_p4, %p4313_p12 }
  0x7c   : > { %p4316_p10 = pnand %p4315_p6, %p4309_p5 }
  0x7e   : > { %4319 = shalt.err (!%p4316_p10)
}
  0x7f   : > { %3997 = dma.hbm_to_vmem [thread:$0]  (!%p4577_p2), %s4584_s14, 2048, %s4619_s9, %s281_s17, %s5120_s11, %s5120_s11, %s5119_s2  }
  0x80   : > { %303 = sbr.rel (%p4490_p8) target bundleno = 7834 (0x1e9a), region = 44  ;;  %s4650_s0 = sand.u32 (!%p4490_p8), 1, %s4392_s22  }
  0x81   : > { %s3388_s30 = sshll.u32 (!%p4490_p8), %s4650_s0, 7  ;;  %s306_s20 = scalar_lea.sflag (!%p4490_p8), [#allocation3], %s4650_s0 }
  0x82   : > { %s4654_s3 = scalar_lea.vmem (!%p4490_p8), [#allocation2], %s3388_s30  ;;  %p5121_p3 = scmp.ne.s32.totalorder (!%p4490_p8), %s5110_s27, 0 }
  0x85   : > { %4363 = dma.done.wait (%p5121_p3), %s306_s20, 2048  }
  0x86   : > { %4365 = vsyncadd (%p5121_p3), %s306_s20, 4294965248  ;;  %s314_s14 = sand.u32 1, %s4471_s25   ;;  %s4661_s13 = scalar_lea.vmem [#allocation5], %s3388_s30 }
  0x87   : > { %s315_s29 = scalar_lea.sflag [#allocation6], %s314_s14 }
  0x88   : > { %4367 = dma.done.wait (%p5121_p3), %s315_s29, 2048  }
  0x89   : > { %4369 = vsyncadd (%p5121_p3), %s315_s29, 4294965248  ;;  %p5122_p8 = scmp.eq.s32.totalorder %s4471_s25, 0 }
  0x8b   : > { %4371 = dma.done.wait (%p5122_p8), [#allocation6], 256   ;;  %p5123_p2 = pmov %p5122_p8 }
  0x8d   : > { %4373 = vsyncadd (%p5123_p2), [#allocation6], 4294967040  ;;  %p5124_p9 = pmov %p5123_p2 }
  0x8e   : > { %p5125_p7 = pmov %p5123_p2 }
  0x8f   : > { %4375 = dma.done.wait (%p5124_p9), [#allocation9], 768  }
  0x90   : > { %4377 = vsyncadd (%p5125_p7), [#allocation9], 4294966528  ;;  %p5126_p1 = pmov %p5123_p2 }
  0x92   : > { %4379 = dma.done.wait (%p5126_p1), [#allocation12], 512   ;;  %p5127_p13 = pmov %p5126_p1 }
  0x93   : > { %v4410_v0 = vmov 0.0   ;;  %vm384_vm0 = vcmask 130048   ;;  %v4679_v1 = vld [vmem:[#allocation7] sm:$0xff]  ;;  %v4681_v2 = vld [vmem:[#allocation7 + $0x8] sm:$0xff]  ;;  %v4683_v3 = vld [vmem:[#allocation10 + $0x18] sm:$0xff]  ;;  %vm466_vm1 = vcmask 261120  }
  0x94   : > { %4381 = vsyncadd (%p5127_p13), [#allocation12], 4294966784  ;;  %3670 = vmatprep.subr.mxu1 %v4410_v0  ;;  %3672 = vmatprep.mubr.msk.f32.mxu1 %vm384_vm0, %v4679_v1  ;;  %v4688_v4 = vld [vmem:[#allocation10 + $0x10] sm:$0xff]  ;;  %v4695_v5 = vld [vmem:[#allocation10 + $0x8] sm:$0xff]  ;;  %s4411_s27 = smov 96   ;;  %s3394_s9 = sshll.u32 %s4650_s0, 4 }
  0x95   : > { %3671 = vmatpush3.msra.mxu1 %v4410_v0  ;;  %v4699_v6 = vld [vmem:[#allocation10] sm:$0xff]  ;;  %v381_v9 = vld [vmem:[%s4654_s3 + $0x8] sm:$0xff]  ;;  %v4709_v21 = vld [vmem:[#allocation8] sm:$0xff]  ;;  %s3510_s2 = sshll.u32 %s4471_s25, 8  ;;  %s367_s11 = scalar_lea.vmem [#allocation13], %s3394_s9 }
  0x96   : > { %3675 = vmatprep.subr.mxu1 %v4683_v3  ;;  %3673 = vmatmul.mubr.msk.f32.vlgmr.msra.gmra.mxu1 %vm384_vm0, %v4681_v2  ;;  %v380_v11 = vld [vmem:[%s4654_s3] sm:$0xff]  ;;  %v4715_v27 = vld [vmem:[#allocation8 + $0x8] sm:$0xff]  ;;  %v4719_v29 = vld [vmem:[#allocation11 + $0x10] sm:$0xff]  ;;  %s3240_s17 = sshll.u32 %s367_s11, 4  ;;  %s5046_s15 = scalar_lea.hbm %s5099_s6, %s3510_s2  ;;  %s5048_s17 = int_to_ptr.vmem [resolvable:$true] %s3240_s17 }
  0x97   : > { %3676 = vmatpush3.msra.mxu1 %v4683_v3  ;;  %3690 = vmatprep.mubr.msk.f32.mxu0 %vm384_vm0, %v4709_v21  ;;  %v4717_v28 = vld [vmem:[#allocation11 + $0x18] sm:$0xff]  ;;  %v4727_v30 = vld [vmem:[#allocation11 + $0x8] sm:$0xff]  ;;  %v4731_v31 = vld [vmem:[#allocation11] sm:$0xff]  ;;  %s3227_s25 = scalar_lea.sflag [#allocation4], %s4650_s0  ;;  %s4320_s10 = scalar_lea.vmem %s5048_s17, 256 }
  0x98   : > { %3677 = vmatprep.subr.mxu1 %v4688_v4  ;;  %v383_v34 = vld [vmem:[%s4661_s13 + $0x8] sm:$0xff]  ;;  %v382_v36 = vld [vmem:[%s4661_s13] sm:$0xff]  ;;  %v3406_v53 = vld [vmem:[%s4654_s3 + $0x18] sm:$0xff]  ;;  %p4321_p0 = scmp.ne.s32.totalorder %s5048_s17, %s4320_s10  ;;  %p5128_p11 = scmp.ne.s32.totalorder %s5116_s18, 0 }
  0x99   : > { %3678 = vmatpush3.msra.mxu1 %v4688_v4  ;;  %v3405_v55 = vld [vmem:[%s4654_s3 + $0x10] sm:$0xff]  ;;  %s4412_s12 = smov [#allocation13]  }
  0x9a   : > { %3679 = vmatprep.subr.mxu1 %v4695_v5  ;;  %p4322_p5 = pnand %p4321_p0, %p5128_p11  ;;  %s4324_s8 = sshll.u32 %s4412_s12, 4  ;;  %s4325_s8 = int_to_ptr.vmem [resolvable:$false] %s4324_s8 }
  0x9b   : > { %3680 = vmatpush3.msra.mxu1 %v4695_v5  ;;  %s4326_s30 = scalar_lea.vmem %s4325_s8, 512  ;;  %p4327_p4 = scmp.lt.s32.totalorder %s5048_s17, %s4325_s8 }
  0x9c   : > { %3681 = vmatprep.subr.mxu1 %v4699_v6  ;;  %p4323_p12 = pneg %p4322_p5  ;;  %p4328_p6 = scmp.lt.s32.totalorder %s4326_s30, %s4320_s10 }
  0x9d   : > { %3682 = vmatpush3.msra.mxu1 %v4699_v6 }
  0x9e   : > { %p4329_p10 = por %p4328_p6, %p4327_p4 }
  0xa0   : > { %p4330_p3 = pnand %p4329_p10, %p4323_p12 }
 0x156   : > { %v3674_v7 = vpop.f32.mrf.mxu1 }
 0x158   : > { %v457_v8 = vpop.f32.mrf.mxu1 }
 0x159   : > { %3683 = vmatprep.mubr.msk.f32.mxu1 %vm466_vm1, %v457_v8 }
 0x15a   : > { %3684 = vmatmul.mubr.msk.f32.vlgmr.msra.gmra.mxu1 %vm466_vm1, %v3674_v7 }
 0x15b   : > { %3708 = vmatprep.mubr.msk.f32.mxu1 %vm384_vm0, %v4679_v1 }
 0x21a   : > { %v3685_v10 = vpop.f32.mrf.mxu1 }
 0x21b   : > { %v549_v12 = vadd.f32 %v3685_v10, %v381_v9 }
 0x21c   : > { %v539_v13 = vpop.f32.mrf.mxu1 }
 0x21d   : > { %v3400_v14 = vmul.f32 -1.442695, %v549_v12  ;;  %v548_v15 = vadd.f32 %v539_v13, %v380_v11 }
 0x21f   : > { %v3399_v16 = vmul.f32 -1.442695, %v548_v15  ;;  %4054 = vpow2.f32 %v3400_v14  ;;  %v3408_v14 = vld [vmem:[%s4661_s13 + $0x18] sm:$0xff] }
 0x221   : > { %4056 = vpow2.f32 %v3399_v16  ;;  %v3407_v16 = vld [vmem:[%s4661_s13 + $0x10] sm:$0xff] }
 0x22c   : > { %v4055_v17 = vpop.eup %4054 }
 0x22d   : > { %v557_v20 = vadd.f32 1.0, %v4055_v17 }
 0x22e   : > { %v4057_v18 = vpop.eup %4056 }
 0x22f   : > { %v556_v19 = vadd.f32 1.0, %v4057_v18 }
 0x231   : > { %4058 = vrcp.f32 %v556_v19 }
 0x232   : > { %4060 = vrcp.f32 %v557_v20 }
 0x23e   : > { %v4059_v22 = vpop.eup %4058 }
 0x23f   : > { %563 = vrot.lane.b32.xlu0 %v4059_v22, %s4411_s27  ;;  %v4061_v23 = vpop.eup %4060  ;;  %v570_v26 = vmul.f32 0.0, %v4059_v22 }
 0x240   : > { %v740_v45 = vsub.f32 1.0, %v4061_v23  ;;  %v738_v48 = vmul.f32 0.0, %v4061_v23 }
 0x243   : > { %567 = vrot.lane.b32.xlu0 %v4061_v23, %s4411_s27 }
 0x2b1   : > { %v564_v24 = vpop.permute.xlu0 %563 }
 0x2b2   : > { %v571_v25 = vmul.f32 0.0, %v564_v24 }
 0x2b4   : > { %3686 = vmatprep.subr.mxu0 %v571_v25 }
 0x2b5   : > { %3687 = vmatpush3.msra.mxu0 %v571_v25  ;;  %v568_v40 = vpop.permute.xlu0 %567 }
 0x2b6   : > { %3688 = vmatprep.subr.mxu0 %v570_v26  ;;  %v741_v41 = vsub.f32 1.0, %v568_v40  ;;  %v739_v43 = vmul.f32 0.0, %v568_v40 }
 0x2b7   : > { %3689 = vmatpush3.msra.mxu0 %v570_v26 }
 0x2b8   : > { %3691 = vmatmul.mubr.msk.f32.vlgmr.msra.gmra.mxu0 %vm384_vm0, %v4715_v27  ;;  %3693 = vmatprep.subr.mxu0 %v4717_v28 }
 0x2b9   : > { %3694 = vmatpush3.msra.mxu0 %v4717_v28 }
 0x2ba   : > { %3695 = vmatprep.subr.mxu0 %v4719_v29 }
 0x2bb   : > { %3696 = vmatpush3.msra.mxu0 %v4719_v29 }
 0x2bc   : > { %3697 = vmatprep.subr.mxu0 %v4727_v30 }
 0x2bd   : > { %3698 = vmatpush3.msra.mxu0 %v4727_v30 }
 0x2be   : > { %3699 = vmatprep.subr.mxu0 %v4731_v31 }
 0x2bf   : > { %3700 = vmatpush3.msra.mxu0 %v4731_v31 }
 0x378   : > { %v3692_v32 = vpop.f32.mrf.mxu0 }
 0x37a   : > { %v644_v33 = vpop.f32.mrf.mxu0 }
 0x37b   : > { %3701 = vmatprep.mubr.msk.f32.mxu0 %vm466_vm1, %v644_v33 }
 0x37c   : > { %3702 = vmatmul.mubr.msk.f32.vlgmr.msra.gmra.mxu0 %vm466_vm1, %v3692_v32 }
 0x37d   : > { %3726 = vmatprep.mubr.msk.f32.mxu0 %vm384_vm0, %v4709_v21 }
 0x43c   : > { %v3703_v35 = vpop.f32.mrf.mxu0 }
 0x43d   : > { %v735_v37 = vadd.f32 %v3703_v35, %v383_v34 }
 0x43e   : > { %v725_v38 = vpop.f32.mrf.mxu0 }
 0x43f   : > { %4062 = vtanh.f32 %v735_v37  ;;  %v734_v39 = vadd.f32 %v725_v38, %v382_v36 }
 0x441   : > { %4064 = vtanh.f32 %v734_v39  ;;  %v3420_v39 = vld [vmem:[%s4654_s3 + $0x28] sm:$0xff] }
 0x44c   : > { %v4063_v42 = vpop.eup %4062 }
 0x44d   : > { %v743_v44 = vmul.f32 %v4063_v42, %v741_v41  ;;  %v3419_v41 = vld [vmem:[%s4654_s3 + $0x20] sm:$0xff] }
 0x44e   : > { %v4065_v46 = vpop.eup %4064 }
 0x44f   : > { %v4741_v47 = vadd.f32 %v743_v44, %v739_v43  ;;  %v742_v49 = vmul.f32 %v4065_v46, %v740_v45 }
 0x451   : > { %3704 = vmatprep.subr.mxu1 %v4741_v47  ;;  %v4744_v50 = vadd.f32 %v742_v49, %v738_v48 }
 0x452   : > { %3705 = vmatpush3.msra.mxu1 %v4741_v47 }
 0x453   : > { %3706 = vmatprep.subr.mxu1 %v4744_v50 }
 0x454   : > { %3707 = vmatpush3.msra.mxu1 %v4744_v50 }
 0x455   : > { %3709 = vmatmul.mubr.msk.f32.vlgmr.msra.gmra.mxu1 %vm384_vm0, %v4681_v2  ;;  %3711 = vmatprep.subr.mxu1 %v4683_v3 }
 0x456   : > { %3712 = vmatpush3.msra.mxu1 %v4683_v3 }
 0x457   : > { %3713 = vmatprep.subr.mxu1 %v4688_v4 }
 0x458   : > { %3714 = vmatpush3.msra.mxu1 %v4688_v4 }
 0x459   : > { %3715 = vmatprep.subr.mxu1 %v4695_v5 }
 0x45a   : > { %3716 = vmatpush3.msra.mxu1 %v4695_v5 }
 0x45b   : > { %3717 = vmatprep.subr.mxu1 %v4699_v6 }
 0x45c   : > { %3718 = vmatpush3.msra.mxu1 %v4699_v6 }
 0x515   : > { %v3710_v51 = vpop.f32.mrf.mxu1 }
 0x517   : > { %v818_v52 = vpop.f32.mrf.mxu1 }
 0x518   : > { %3719 = vmatprep.mubr.msk.f32.mxu1 %vm466_vm1, %v818_v52 }
 0x519   : > { %3720 = vmatmul.mubr.msk.f32.vlgmr.msra.gmra.mxu1 %vm466_vm1, %v3710_v51 }
 0x51a   : > { %3744 = vmatprep.mubr.msk.f32.mxu1 %vm384_vm0, %v4679_v1 }
 0x5d9   : > { %v3721_v54 = vpop.f32.mrf.mxu1 }
 0x5da   : > { %v909_v56 = vadd.f32 %v3721_v54, %v3406_v53 }
 0x5db   : > { %v899_v57 = vpop.f32.mrf.mxu1 }
 0x5dc   : > { %v3414_v58 = vmul.f32 -1.442695, %v909_v56  ;;  %v908_v59 = vadd.f32 %v3405_v55, %v899_v57 }
 0x5de   : > { %v3413_v60 = vmul.f32 -1.442695, %v908_v59  ;;  %4066 = vpow2.f32 %v3414_v58  ;;  %v3422_v58 = vld [vmem:[%s4661_s13 + $0x28] sm:$0xff] }
 0x5e0   : > { %4068 = vpow2.f32 %v3413_v60  ;;  %v3421_v60 = vld [vmem:[%s4661_s13 + $0x20] sm:$0xff] }
 0x5eb   : > { %v4067_v61 = vpop.eup %4066 }
 0x5ec   : > { %v917_v0 = vadd.f32 1.0, %v4067_v61 }
 0x5ed   : > { %v4069_v62 = vpop.eup %4068 }
 0x5ee   : > { %v916_v63 = vadd.f32 1.0, %v4069_v62 }
 0x5f0   : > { %4070 = vrcp.f32 %v916_v63 }
 0x5f1   : > { %4072 = vrcp.f32 %v917_v0 }
 0x5fd   : > { %v4071_v7 = vpop.eup %4070 }
 0x5fe   : > { %923 = vrot.lane.b32.xlu1 %v4071_v7, %s4411_s27  ;;  %v4073_v8 = vpop.eup %4072  ;;  %v930_v11 = vmul.f32 %v4071_v7, %v4744_v50 }
 0x5ff   : > { %v1094_v26 = vsub.f32 1.0, %v4073_v8  ;;  %v1092_v34 = vmul.f32 %v4073_v8, %v4744_v50 }
 0x602   : > { %927 = vrot.lane.b32.xlu1 %v4073_v8, %s4411_s27 }
 0x670   : > { %v924_v9 = vpop.permute.xlu1 %923 }
 0x671   : > { %v931_v10 = vmul.f32 %v924_v9, %v4741_v47 }
 0x673   : > { %3722 = vmatprep.subr.mxu0 %v931_v10 }
 0x674   : > { %3723 = vmatpush3.msra.mxu0 %v931_v10  ;;  %v928_v20 = vpop.permute.xlu1 %927 }
 0x675   : > { %3724 = vmatprep.subr.mxu0 %v930_v11  ;;  %v1095_v22 = vsub.f32 1.0, %v928_v20  ;;  %v1093_v24 = vmul.f32 %v928_v20, %v4741_v47 }
 0x676   : > { %3725 = vmatpush3.msra.mxu0 %v930_v11 }
 0x677   : > { %3727 = vmatmul.mubr.msk.f32.vlgmr.msra.gmra.mxu0 %vm384_vm0, %v4715_v27  ;;  %3729 = vmatprep.subr.mxu0 %v4717_v28 }
 0x678   : > { %3730 = vmatpush3.msra.mxu0 %v4717_v28 }
 0x679   : > { %3731 = vmatprep.subr.mxu0 %v4719_v29 }
 0x67a   : > { %3732 = vmatpush3.msra.mxu0 %v4719_v29 }
 0x67b   : > { %3733 = vmatprep.subr.mxu0 %v4727_v30 }
 0x67c   : > { %3734 = vmatpush3.msra.mxu0 %v4727_v30 }
 0x67d   : > { %3735 = vmatprep.subr.mxu0 %v4731_v31 }
 0x67e   : > { %3736 = vmatpush3.msra.mxu0 %v4731_v31 }
 0x737   : > { %v3728_v12 = vpop.f32.mrf.mxu0 }
 0x739   : > { %v998_v13 = vpop.f32.mrf.mxu0 }
 0x73a   : > { %3737 = vmatprep.mubr.msk.f32.mxu0 %vm466_vm1, %v998_v13 }
 0x73b   : > { %3738 = vmatmul.mubr.msk.f32.vlgmr.msra.gmra.mxu0 %vm466_vm1, %v3728_v12 }
 0x73c   : > { %3762 = vmatprep.mubr.msk.f32.mxu0 %vm384_vm0, %v4709_v21 }
 0x7fb   : > { %v3739_v15 = vpop.f32.mrf.mxu0 }
 0x7fc   : > { %v1089_v17 = vadd.f32 %v3739_v15, %v3408_v14 }
 0x7fd   : > { %v1079_v18 = vpop.f32.mrf.mxu0 }
 0x7fe   : > { %4074 = vtanh.f32 %v1089_v17  ;;  %v1088_v19 = vadd.f32 %v3407_v16, %v1079_v18 }
 0x800   : > { %4076 = vtanh.f32 %v1088_v19  ;;  %v3434_v19 = vld [vmem:[%s4654_s3 + $0x38] sm:$0xff] }
 0x80b   : > { %v4075_v23 = vpop.eup %4074 }
 0x80c   : > { %v1097_v25 = vmul.f32 %v4075_v23, %v1095_v22  ;;  %v3433_v22 = vld [vmem:[%s4654_s3 + $0x30] sm:$0xff] }
 0x80d   : > { %v4077_v32 = vpop.eup %4076 }
 0x80e   : > { %v4786_v33 = vadd.f32 %v1097_v25, %v1093_v24  ;;  %v1096_v35 = vmul.f32 %v4077_v32, %v1094_v26 }
 0x810   : > { %3740 = vmatprep.subr.mxu1 %v4786_v33  ;;  %v4790_v36 = vadd.f32 %v1096_v35, %v1092_v34 }
 0x811   : > { %3741 = vmatpush3.msra.mxu1 %v4786_v33 }
 0x812   : > { %3742 = vmatprep.subr.mxu1 %v4790_v36 }
 0x813   : > { %3743 = vmatpush3.msra.mxu1 %v4790_v36 }
 0x814   : > { %3745 = vmatmul.mubr.msk.f32.vlgmr.msra.gmra.mxu1 %vm384_vm0, %v4681_v2  ;;  %3747 = vmatprep.subr.mxu1 %v4683_v3 }
 0x815   : > { %3748 = vmatpush3.msra.mxu1 %v4683_v3 }
 0x816   : > { %3749 = vmatprep.subr.mxu1 %v4688_v4 }
 0x817   : > { %3750 = vmatpush3.msra.mxu1 %v4688_v4 }
 0x818   : > { %3751 = vmatprep.subr.mxu1 %v4695_v5 }
 0x819   : > { %3752 = vmatpush3.msra.mxu1 %v4695_v5 }
 0x81a   : > { %3753 = vmatprep.subr.mxu1 %v4699_v6 }
 0x81b   : > { %3754 = vmatpush3.msra.mxu1 %v4699_v6 }
 0x8d4   : > { %v3746_v37 = vpop.f32.mrf.mxu1 }
 0x8d6   : > { %v1172_v38 = vpop.f32.mrf.mxu1 }
 0x8d7   : > { %3755 = vmatprep.mubr.msk.f32.mxu1 %vm466_vm1, %v1172_v38 }
 0x8d8   : > { %3756 = vmatmul.mubr.msk.f32.vlgmr.msra.gmra.mxu1 %vm466_vm1, %v3746_v37 }
 0x8d9   : > { %3780 = vmatprep.mubr.msk.f32.mxu1 %vm384_vm0, %v4679_v1 }
 0x998   : > { %v3757_v40 = vpop.f32.mrf.mxu1 }
 0x999   : > { %v1263_v42 = vadd.f32 %v3757_v40, %v3420_v39 }
 0x99a   : > { %v1253_v43 = vpop.f32.mrf.mxu1 }
 0x99b   : > { %v3428_v44 = vmul.f32 -1.442695, %v1263_v42  ;;  %v1262_v45 = vadd.f32 %v3419_v41, %v1253_v43 }
 0x99d   : > { %4078 = vpow2.f32 %v3428_v44  ;;  %v3427_v46 = vmul.f32 -1.442695, %v1262_v45  ;;  %v3436_v44 = vld [vmem:[%s4661_s13 + $0x38] sm:$0xff] }
 0x99f   : > { %4080 = vpow2.f32 %v3427_v46  ;;  %v3435_v46 = vld [vmem:[%s4661_s13 + $0x30] sm:$0xff] }
 0x9aa   : > { %v4079_v47 = vpop.eup %4078 }
 0x9ab   : > { %v1271_v48 = vadd.f32 1.0, %v4079_v47 }
 0x9ac   : > { %v4081_v49 = vpop.eup %4080 }
 0x9ad   : > { %4082 = vrcp.f32 %v1271_v48  ;;  %v1270_v50 = vadd.f32 1.0, %v4081_v49 }
 0x9af   : > { %4084 = vrcp.f32 %v1270_v50 }
 0x9ba   : > { %v4083_v51 = vpop.eup %4082 }
 0x9bb   : > { %1281 = vrot.lane.b32.xlu1 %v4083_v51, %s4411_s27  ;;  %v1448_v11 = vsub.f32 1.0, %v4083_v51  ;;  %v1446_v14 = vmul.f32 %v4083_v51, %v4790_v36 }
 0x9bc   : > { %v4085_v52 = vpop.eup %4084 }
 0x9bd   : > { %1277 = vrot.lane.b32.xlu0 %v4085_v52, %s4411_s27  ;;  %v1284_v55 = vmul.f32 %v4085_v52, %v4790_v36 }
 0xa2d   : > { %v1282_v0 = vpop.permute.xlu1 %1281 }
 0xa2e   : > { %v1449_v7 = vsub.f32 1.0, %v1282_v0  ;;  %v1447_v9 = vmul.f32 %v1282_v0, %v4786_v33 }
 0xa2f   : > { %v1278_v53 = vpop.permute.xlu0 %1277 }
 0xa30   : > { %v1285_v54 = vmul.f32 %v1278_v53, %v4786_v33 }
 0xa32   : > { %3758 = vmatprep.subr.mxu0 %v1285_v54 }
 0xa33   : > { %3759 = vmatpush3.msra.mxu0 %v1285_v54 }
 0xa34   : > { %3760 = vmatprep.subr.mxu0 %v1284_v55 }
 0xa35   : > { %3761 = vmatpush3.msra.mxu0 %v1284_v55 }
 0xa36   : > { %3763 = vmatmul.mubr.msk.f32.vlgmr.msra.gmra.mxu0 %vm384_vm0, %v4715_v27  ;;  %3765 = vmatprep.subr.mxu0 %v4717_v28 }
 0xa37   : > { %3766 = vmatpush3.msra.mxu0 %v4717_v28 }
 0xa38   : > { %3767 = vmatprep.subr.mxu0 %v4719_v29 }
 0xa39   : > { %3768 = vmatpush3.msra.mxu0 %v4719_v29 }
 0xa3a   : > { %3769 = vmatprep.subr.mxu0 %v4727_v30 }
 0xa3b   : > { %3770 = vmatpush3.msra.mxu0 %v4727_v30 }
 0xa3c   : > { %3771 = vmatprep.subr.mxu0 %v4731_v31 }
 0xa3d   : > { %3772 = vmatpush3.msra.mxu0 %v4731_v31 }
 0xaf6   : > { %v3764_v56 = vpop.f32.mrf.mxu0 }
 0xaf8   : > { %v1352_v57 = vpop.f32.mrf.mxu0 }
 0xaf9   : > { %3773 = vmatprep.mubr.msk.f32.mxu0 %vm466_vm1, %v1352_v57 }
 0xafa   : > { %3774 = vmatmul.mubr.msk.f32.vlgmr.msra.gmra.mxu0 %vm466_vm1, %v3764_v56 }
 0xafb   : > { %3798 = vmatprep.mubr.msk.f32.mxu0 %vm384_vm0, %v4709_v21 }
 0xbba   : > { %v3775_v59 = vpop.f32.mrf.mxu0 }
 0xbbb   : > { %v1443_v61 = vadd.f32 %v3775_v59, %v3422_v58 }
 0xbbc   : > { %v1433_v62 = vpop.f32.mrf.mxu0 }
 0xbbd   : > { %4086 = vtanh.f32 %v1443_v61  ;;  %v1442_v63 = vadd.f32 %v3421_v60, %v1433_v62 }
 0xbbf   : > { %4088 = vtanh.f32 %v1442_v63  ;;  %v3448_v63 = vld [vmem:[%s4654_s3 + $0x48] sm:$0xff] }
 0xbca   : > { %v4087_v8 = vpop.eup %4086 }
 0xbcb   : > { %v1451_v10 = vmul.f32 %v4087_v8, %v1449_v7  ;;  %v3447_v7 = vld [vmem:[%s4654_s3 + $0x40] sm:$0xff] }
 0xbcc   : > { %v4089_v12 = vpop.eup %4088 }
 0xbcd   : > { %v4832_v13 = vadd.f32 %v1451_v10, %v1447_v9  ;;  %v1450_v15 = vmul.f32 %v4089_v12, %v1448_v11 }
 0xbcf   : > { %3776 = vmatprep.subr.mxu1 %v4832_v13  ;;  %v4836_v16 = vadd.f32 %v1450_v15, %v1446_v14 }
 0xbd0   : > { %3777 = vmatpush3.msra.mxu1 %v4832_v13 }
 0xbd1   : > { %3778 = vmatprep.subr.mxu1 %v4836_v16 }
 0xbd2   : > { %3779 = vmatpush3.msra.mxu1 %v4836_v16 }
 0xbd3   : > { %3781 = vmatmul.mubr.msk.f32.vlgmr.msra.gmra.mxu1 %vm384_vm0, %v4681_v2  ;;  %3783 = vmatprep.subr.mxu1 %v4683_v3 }
 0xbd4   : > { %3784 = vmatpush3.msra.mxu1 %v4683_v3 }
 0xbd5   : > { %3785 = vmatprep.subr.mxu1 %v4688_v4 }
 0xbd6   : > { %3786 = vmatpush3.msra.mxu1 %v4688_v4 }
 0xbd7   : > { %3787 = vmatprep.subr.mxu1 %v4695_v5 }
 0xbd8   : > { %3788 = vmatpush3.msra.mxu1 %v4695_v5 }
 0xbd9   : > { %3789 = vmatprep.subr.mxu1 %v4699_v6 }
 0xbda   : > { %3790 = vmatpush3.msra.mxu1 %v4699_v6 }
 0xc93   : > { %v3782_v17 = vpop.f32.mrf.mxu1 }
 0xc95   : > { %v1526_v18 = vpop.f32.mrf.mxu1 }
 0xc96   : > { %3791 = vmatprep.mubr.msk.f32.mxu1 %vm466_vm1, %v1526_v18 }
 0xc97   : > { %3792 = vmatmul.mubr.msk.f32.vlgmr.msra.gmra.mxu1 %vm466_vm1, %v3782_v17 }
 0xc98   : > { %3816 = vmatprep.mubr.msk.f32.mxu1 %vm384_vm0, %v4679_v1 }
 0xd57   : > { %v3793_v20 = vpop.f32.mrf.mxu1 }
 0xd58   : > { %v1617_v23 = vadd.f32 %v3793_v20, %v3434_v19 }
 0xd59   : > { %v1607_v24 = vpop.f32.mrf.mxu1 }
 0xd5a   : > { %v3442_v25 = vmul.f32 -1.442695, %v1617_v23  ;;  %v1616_v26 = vadd.f32 %v3433_v22, %v1607_v24 }
 0xd5c   : > { %4090 = vpow2.f32 %v3442_v25  ;;  %v3441_v32 = vmul.f32 -1.442695, %v1616_v26  ;;  %v3450_v25 = vld [vmem:[%s4661_s13 + $0x48] sm:$0xff] }
 0xd5e   : > { %4092 = vpow2.f32 %v3441_v32  ;;  %v3449_v32 = vld [vmem:[%s4661_s13 + $0x40] sm:$0xff] }
 0xd69   : > { %v4091_v33 = vpop.eup %4090 }
 0xd6a   : > { %v1625_v34 = vadd.f32 1.0, %v4091_v33 }
 0xd6b   : > { %v4093_v35 = vpop.eup %4092 }
 0xd6c   : > { %4094 = vrcp.f32 %v1625_v34  ;;  %v1624_v36 = vadd.f32 1.0, %v4093_v35 }
 0xd6e   : > { %4096 = vrcp.f32 %v1624_v36 }
 0xd79   : > { %v4095_v37 = vpop.eup %4094 }
 0xd7a   : > { %1635 = vrot.lane.b32.xlu1 %v4095_v37, %s4411_s27  ;;  %v1802_v55 = vsub.f32 1.0, %v4095_v37  ;;  %v1800_v58 = vmul.f32 %v4095_v37, %v4836_v16 }
 0xd7b   : > { %v4097_v38 = vpop.eup %4096 }
 0xd7c   : > { %1631 = vrot.lane.b32.xlu0 %v4097_v38, %s4411_s27  ;;  %v1638_v41 = vmul.f32 %v4097_v38, %v4836_v16 }
 0xdec   : > { %v1636_v50 = vpop.permute.xlu1 %1635 }
 0xded   : > { %v1803_v51 = vsub.f32 1.0, %v1636_v50  ;;  %v1801_v53 = vmul.f32 %v1636_v50, %v4832_v13 }
 0xdee   : > { %v1632_v39 = vpop.permute.xlu0 %1631 }
 0xdef   : > { %v1639_v40 = vmul.f32 %v1632_v39, %v4832_v13 }
 0xdf1   : > { %3794 = vmatprep.subr.mxu0 %v1639_v40 }
 0xdf2   : > { %3795 = vmatpush3.msra.mxu0 %v1639_v40 }
 0xdf3   : > { %3796 = vmatprep.subr.mxu0 %v1638_v41 }
 0xdf4   : > { %3797 = vmatpush3.msra.mxu0 %v1638_v41 }
 0xdf5   : > { %3799 = vmatmul.mubr.msk.f32.vlgmr.msra.gmra.mxu0 %vm384_vm0, %v4715_v27  ;;  %3801 = vmatprep.subr.mxu0 %v4717_v28 }
 0xdf6   : > { %3802 = vmatpush3.msra.mxu0 %v4717_v28 }
 0xdf7   : > { %3803 = vmatprep.subr.mxu0 %v4719_v29 }
 0xdf8   : > { %3804 = vmatpush3.msra.mxu0 %v4719_v29 }
 0xdf9   : > { %3805 = vmatprep.subr.mxu0 %v4727_v30 }
 0xdfa   : > { %3806 = vmatpush3.msra.mxu0 %v4727_v30 }
 0xdfb   : > { %3807 = vmatprep.subr.mxu0 %v4731_v31 }
 0xdfc   : > { %3808 = vmatpush3.msra.mxu0 %v4731_v31 }
 0xeb5   : > { %v3800_v42 = vpop.f32.mrf.mxu0 }
 0xeb7   : > { %v1706_v43 = vpop.f32.mrf.mxu0 }
 0xeb8   : > { %3809 = vmatprep.mubr.msk.f32.mxu0 %vm466_vm1, %v1706_v43 }
 0xeb9   : > { %3810 = vmatmul.mubr.msk.f32.vlgmr.msra.gmra.mxu0 %vm466_vm1, %v3800_v42 }
 0xeba   : > { %3834 = vmatprep.mubr.msk.f32.mxu0 %vm384_vm0, %v4709_v21 }
 0xf79   : > { %v3811_v45 = vpop.f32.mrf.mxu0 }
 0xf7a   : > { %v1797_v47 = vadd.f32 %v3811_v45, %v3436_v44 }
 0xf7b   : > { %v1787_v48 = vpop.f32.mrf.mxu0 }
 0xf7c   : > { %4098 = vtanh.f32 %v1797_v47  ;;  %v1796_v49 = vadd.f32 %v3435_v46, %v1787_v48 }
 0xf7e   : > { %4100 = vtanh.f32 %v1796_v49  ;;  %v3462_v49 = vld [vmem:[%s4654_s3 + $0x58] sm:$0xff] }
 0xf89   : > { %v4099_v52 = vpop.eup %4098 }
 0xf8a   : > { %v1805_v54 = vmul.f32 %v4099_v52, %v1803_v51  ;;  %v3461_v51 = vld [vmem:[%s4654_s3 + $0x50] sm:$0xff] }
 0xf8b   : > { %v4101_v56 = vpop.eup %4100 }
 0xf8c   : > { %v4878_v57 = vadd.f32 %v1805_v54, %v1801_v53  ;;  %v1804_v59 = vmul.f32 %v4101_v56, %v1802_v55 }
 0xf8e   : > { %3812 = vmatprep.subr.mxu1 %v4878_v57  ;;  %v4882_v60 = vadd.f32 %v1804_v59, %v1800_v58 }
 0xf8f   : > { %3813 = vmatpush3.msra.mxu1 %v4878_v57 }
 0xf90   : > { %3814 = vmatprep.subr.mxu1 %v4882_v60 }
 0xf91   : > { %3815 = vmatpush3.msra.mxu1 %v4882_v60 }
 0xf92   : > { %3817 = vmatmul.mubr.msk.f32.vlgmr.msra.gmra.mxu1 %vm384_vm0, %v4681_v2  ;;  %3819 = vmatprep.subr.mxu1 %v4683_v3 }
 0xf93   : > { %3820 = vmatpush3.msra.mxu1 %v4683_v3 }
 0xf94   : > { %3821 = vmatprep.subr.mxu1 %v4688_v4 }
 0xf95   : > { %3822 = vmatpush3.msra.mxu1 %v4688_v4 }
 0xf96   : > { %3823 = vmatprep.subr.mxu1 %v4695_v5 }
 0xf97   : > { %3824 = vmatpush3.msra.mxu1 %v4695_v5 }
 0xf98   : > { %3825 = vmatprep.subr.mxu1 %v4699_v6 }
 0xf99   : > { %3826 = vmatpush3.msra.mxu1 %v4699_v6 }
0x1052   : > { %v3818_v61 = vpop.f32.mrf.mxu1 }
0x1054   : > { %v1880_v62 = vpop.f32.mrf.mxu1 }
0x1055   : > { %3827 = vmatprep.mubr.msk.f32.mxu1 %vm466_vm1, %v1880_v62 }
0x1056   : > { %3828 = vmatmul.mubr.msk.f32.vlgmr.msra.gmra.mxu1 %vm466_vm1, %v3818_v61 }
0x1057   : > { %3852 = vmatprep.mubr.msk.f32.mxu1 %vm384_vm0, %v4679_v1 }
0x1116   : > { %v3829_v0 = vpop.f32.mrf.mxu1 }
0x1117   : > { %v1971_v8 = vadd.f32 %v3829_v0, %v3448_v63 }
0x1118   : > { %v1961_v9 = vpop.f32.mrf.mxu1 }
0x1119   : > { %v3456_v10 = vmul.f32 -1.442695, %v1971_v8  ;;  %v1970_v11 = vadd.f32 %v3447_v7, %v1961_v9 }
0x111b   : > { %4102 = vpow2.f32 %v3456_v10  ;;  %v3455_v12 = vmul.f32 -1.442695, %v1970_v11  ;;  %v3464_v10 = vld [vmem:[%s4661_s13 + $0x58] sm:$0xff] }
0x111d   : > { %4104 = vpow2.f32 %v3455_v12  ;;  %v3463_v12 = vld [vmem:[%s4661_s13 + $0x50] sm:$0xff] }
0x1128   : > { %v4103_v13 = vpop.eup %4102 }
0x1129   : > { %v1979_v14 = vadd.f32 1.0, %v4103_v13 }
0x112a   : > { %v4105_v15 = vpop.eup %4104 }
0x112b   : > { %4106 = vrcp.f32 %v1979_v14  ;;  %v1978_v16 = vadd.f32 1.0, %v4105_v15 }
0x112d   : > { %4108 = vrcp.f32 %v1978_v16 }
0x1138   : > { %v4107_v17 = vpop.eup %4106 }
0x1139   : > { %1989 = vrot.lane.b32.xlu1 %v4107_v17, %s4411_s27  ;;  %v2156_v41 = vsub.f32 1.0, %v4107_v17  ;;  %v2154_v44 = vmul.f32 %v4107_v17, %v4882_v60 }
0x113a   : > { %v4109_v18 = vpop.eup %4108 }
0x113b   : > { %1985 = vrot.lane.b32.xlu0 %v4109_v18, %s4411_s27  ;;  %v1992_v22 = vmul.f32 %v4109_v18, %v4882_v60 }
0x11ab   : > { %v1990_v36 = vpop.permute.xlu1 %1989 }
0x11ac   : > { %v2157_v37 = vsub.f32 1.0, %v1990_v36  ;;  %v2155_v39 = vmul.f32 %v1990_v36, %v4878_v57 }
0x11ad   : > { %v1986_v19 = vpop.permute.xlu0 %1985 }
0x11ae   : > { %v1993_v20 = vmul.f32 %v1986_v19, %v4878_v57 }
0x11b0   : > { %3830 = vmatprep.subr.mxu0 %v1993_v20 }
0x11b1   : > { %3831 = vmatpush3.msra.mxu0 %v1993_v20 }
0x11b2   : > { %3832 = vmatprep.subr.mxu0 %v1992_v22 }
0x11b3   : > { %3833 = vmatpush3.msra.mxu0 %v1992_v22 }
0x11b4   : > { %3835 = vmatmul.mubr.msk.f32.vlgmr.msra.gmra.mxu0 %vm384_vm0, %v4715_v27  ;;  %3837 = vmatprep.subr.mxu0 %v4717_v28 }
0x11b5   : > { %3838 = vmatpush3.msra.mxu0 %v4717_v28 }
0x11b6   : > { %3839 = vmatprep.subr.mxu0 %v4719_v29 }
0x11b7   : > { %3840 = vmatpush3.msra.mxu0 %v4719_v29 }
0x11b8   : > { %3841 = vmatprep.subr.mxu0 %v4727_v30 }
0x11b9   : > { %3842 = vmatpush3.msra.mxu0 %v4727_v30 }
0x11ba   : > { %3843 = vmatprep.subr.mxu0 %v4731_v31 }
0x11bb   : > { %3844 = vmatpush3.msra.mxu0 %v4731_v31 }
0x1274   : > { %v3836_v23 = vpop.f32.mrf.mxu0 }
0x1276   : > { %v2060_v24 = vpop.f32.mrf.mxu0 }
0x1277   : > { %3845 = vmatprep.mubr.msk.f32.mxu0 %vm466_vm1, %v2060_v24 }
0x1278   : > { %3846 = vmatmul.mubr.msk.f32.vlgmr.msra.gmra.mxu0 %vm466_vm1, %v3836_v23 }
0x1279   : > { %3870 = vmatprep.mubr.msk.f32.mxu0 %vm384_vm0, %v4709_v21 }
0x1338   : > { %v3847_v26 = vpop.f32.mrf.mxu0 }
0x1339   : > { %v2151_v33 = vadd.f32 %v3847_v26, %v3450_v25 }
0x133a   : > { %v2141_v34 = vpop.f32.mrf.mxu0 }
0x133b   : > { %4110 = vtanh.f32 %v2151_v33  ;;  %v2150_v35 = vadd.f32 %v3449_v32, %v2141_v34 }
0x133d   : > { %4112 = vtanh.f32 %v2150_v35 }
0x1348   : > { %v4111_v38 = vpop.eup %4110 }
0x1349   : > { %v2159_v40 = vmul.f32 %v4111_v38, %v2157_v37 }
0x134a   : > { %v4113_v42 = vpop.eup %4112 }
0x134b   : > { %v4924_v43 = vadd.f32 %v2159_v40, %v2155_v39  ;;  %v2158_v45 = vmul.f32 %v4113_v42, %v2156_v41 }
0x134d   : > { %3848 = vmatprep.subr.mxu1 %v4924_v43  ;;  %v4928_v46 = vadd.f32 %v2158_v45, %v2154_v44 }
0x134e   : > { %3849 = vmatpush3.msra.mxu1 %v4924_v43 }
0x134f   : > { %3850 = vmatprep.subr.mxu1 %v4928_v46 }
0x1350   : > { %3851 = vmatpush3.msra.mxu1 %v4928_v46 }
0x1351   : > { %3853 = vmatmul.mubr.msk.f32.vlgmr.msra.gmra.mxu1 %vm384_vm0, %v4681_v2  ;;  %3855 = vmatprep.subr.mxu1 %v4683_v3 }
0x1352   : > { %3856 = vmatpush3.msra.mxu1 %v4683_v3 }
0x1353   : > { %3857 = vmatprep.subr.mxu1 %v4688_v4 }
0x1354   : > { %3858 = vmatpush3.msra.mxu1 %v4688_v4 }
0x1355   : > { %3859 = vmatprep.subr.mxu1 %v4695_v5 }
0x1356   : > { %3860 = vmatpush3.msra.mxu1 %v4695_v5 }
0x1357   : > { %3861 = vmatprep.subr.mxu1 %v4699_v6 }
0x1358   : > { %3862 = vmatpush3.msra.mxu1 %v4699_v6 }
0x1411   : > { %v3854_v47 = vpop.f32.mrf.mxu1 }
0x1413   : > { %v2234_v48 = vpop.f32.mrf.mxu1 }
0x1414   : > { %3863 = vmatprep.mubr.msk.f32.mxu1 %vm466_vm1, %v2234_v48 }
0x1415   : > { %3864 = vmatmul.mubr.msk.f32.vlgmr.msra.gmra.mxu1 %vm466_vm1, %v3854_v47 }
0x1416   : > { %3888 = vmatprep.mubr.msk.f32.mxu1 %vm384_vm0, %v4679_v1 }
0x14d5   : > { %v3865_v50 = vpop.f32.mrf.mxu1 }
0x14d6   : > { %v2325_v52 = vadd.f32 %v3865_v50, %v3462_v49 }
0x14d7   : > { %v2315_v53 = vpop.f32.mrf.mxu1 }
0x14d8   : > { %v3470_v54 = vmul.f32 -1.442695, %v2325_v52  ;;  %v2324_v55 = vadd.f32 %v3461_v51, %v2315_v53 }
0x14da   : > { %4114 = vpow2.f32 %v3470_v54  ;;  %v3469_v56 = vmul.f32 -1.442695, %v2324_v55 }
0x14dc   : > { %4116 = vpow2.f32 %v3469_v56 }
0x14e7   : > { %v4115_v57 = vpop.eup %4114 }
0x14e8   : > { %v2333_v58 = vadd.f32 1.0, %v4115_v57 }
0x14e9   : > { %v4117_v59 = vpop.eup %4116 }
0x14ea   : > { %4118 = vrcp.f32 %v2333_v58  ;;  %v2332_v60 = vadd.f32 1.0, %v4117_v59  ;;  %v4150_v59 = vld [vmem:[#allocation7 + $0x8] sm:$0xff] }
0x14ec   : > { %4120 = vrcp.f32 %v2332_v60  ;;  %v4151_v60 = vld [vmem:[#allocation10 + $0x18] sm:$0xff] }
0x14f7   : > { %v4119_v61 = vpop.eup %4118 }
0x14f8   : > { %2343 = vrot.lane.b32.xlu1 %v4119_v61, %s4411_s27  ;;  %v2510_v22 = vsub.f32 1.0, %v4119_v61  ;;  %v2508_v25 = vmul.f32 %v4119_v61, %v4928_v46  ;;  %v4152_v61 = vld [vmem:[#allocation10 + $0x10] sm:$0xff] }
0x14f9   : > { %v4121_v62 = vpop.eup %4120 }
0x14fa   : > { %2339 = vrot.lane.b32.xlu0 %v4121_v62, %s4411_s27  ;;  %v2346_v7 = vmul.f32 %v4121_v62, %v4928_v46  ;;  %v4153_v62 = vld [vmem:[#allocation10 + $0x8] sm:$0xff] }
0x156a   : > { %v2344_v16 = vpop.permute.xlu1 %2343 }
0x156b   : > { %v2511_v17 = vsub.f32 1.0, %v2344_v16  ;;  %v2509_v19 = vmul.f32 %v2344_v16, %v4924_v43 }
0x156c   : > { %v2340_v63 = vpop.permute.xlu0 %2339 }
0x156d   : > { %v2347_v0 = vmul.f32 %v2340_v63, %v4924_v43  ;;  %v4154_v63 = vld [vmem:[#allocation10] sm:$0xff] }
0x156f   : > { %3866 = vmatprep.subr.mxu0 %v2347_v0 }
0x1570   : > { %3867 = vmatpush3.msra.mxu0 %v2347_v0 }
0x1571   : > { %3868 = vmatprep.subr.mxu0 %v2346_v7 }
0x1572   : > { %3869 = vmatpush3.msra.mxu0 %v2346_v7 }
0x1573   : > { %3871 = vmatmul.mubr.msk.f32.vlgmr.msra.gmra.mxu0 %vm384_vm0, %v4715_v27  ;;  %3873 = vmatprep.subr.mxu0 %v4717_v28 }
0x1574   : > { %3874 = vmatpush3.msra.mxu0 %v4717_v28 }
0x1575   : > { %3875 = vmatprep.subr.mxu0 %v4719_v29 }
0x1576   : > { %3876 = vmatpush3.msra.mxu0 %v4719_v29 }
0x1577   : > { %3877 = vmatprep.subr.mxu0 %v4727_v30 }
0x1578   : > { %3878 = vmatpush3.msra.mxu0 %v4727_v30 }
0x1579   : > { %3879 = vmatprep.subr.mxu0 %v4731_v31 }
0x157a   : > { %3880 = vmatpush3.msra.mxu0 %v4731_v31 }
0x1633   : > { %v3872_v8 = vpop.f32.mrf.mxu0 }
0x1635   : > { %v2414_v9 = vpop.f32.mrf.mxu0 }
0x1636   : > { %3881 = vmatprep.mubr.msk.f32.mxu0 %vm466_vm1, %v2414_v9 }
0x1637   : > { %3882 = vmatmul.mubr.msk.f32.vlgmr.msra.gmra.mxu0 %vm466_vm1, %v3872_v8  ;;  %v3490_v8 = vld [vmem:[%s4654_s3 + $0x78] sm:$0xff] }
0x1638   : > { %3906 = vmatprep.mubr.msk.f32.mxu0 %vm384_vm0, %v4709_v21 }
0x16f7   : > { %v3883_v11 = vpop.f32.mrf.mxu0 }
0x16f8   : > { %v2505_v13 = vadd.f32 %v3883_v11, %v3464_v10  ;;  %v3489_v10 = vld [vmem:[%s4654_s3 + $0x70] sm:$0xff] }
0x16f9   : > { %v2495_v14 = vpop.f32.mrf.mxu0 }
0x16fa   : > { %4122 = vtanh.f32 %v2505_v13  ;;  %v2504_v15 = vadd.f32 %v3463_v12, %v2495_v14 }
0x16fc   : > { %4124 = vtanh.f32 %v2504_v15 }
0x1707   : > { %v4123_v18 = vpop.eup %4122 }
0x1708   : > { %v2513_v20 = vmul.f32 %v4123_v18, %v2511_v17 }
0x1709   : > { %v4125_v23 = vpop.eup %4124 }
0x170a   : > { %v4970_v24 = vadd.f32 %v2513_v20, %v2509_v19  ;;  %v2512_v26 = vmul.f32 %v4125_v23, %v2510_v22 }
0x170c   : > { %3884 = vmatprep.subr.mxu1 %v4970_v24  ;;  %v4974_v32 = vadd.f32 %v2512_v26, %v2508_v25  ;;  %v4155_v26 = vld [vmem:[#allocation8 + $0x8] sm:$0xff] }
0x170d   : > { %3885 = vmatpush3.msra.mxu1 %v4970_v24 }
0x170e   : > { %3886 = vmatprep.subr.mxu1 %v4974_v32 }
0x170f   : > { %3887 = vmatpush3.msra.mxu1 %v4974_v32 }
0x1710   : > { %3889 = vmatmul.mubr.msk.f32.vlgmr.msra.gmra.mxu1 %vm384_vm0, %v4681_v2  ;;  %3891 = vmatprep.subr.mxu1 %v4683_v3  ;;  %v3476_v2 = vld [vmem:[%s4654_s3 + $0x68] sm:$0xff] }
0x1711   : > { %3892 = vmatpush3.msra.mxu1 %v4683_v3 }
0x1712   : > { %3893 = vmatprep.subr.mxu1 %v4688_v4 }
0x1713   : > { %3894 = vmatpush3.msra.mxu1 %v4688_v4  ;;  %v3475_v4 = vld [vmem:[%s4654_s3 + $0x60] sm:$0xff] }
0x1714   : > { %3895 = vmatprep.subr.mxu1 %v4695_v5 }
0x1715   : > { %3896 = vmatpush3.msra.mxu1 %v4695_v5 }
0x1716   : > { %3897 = vmatprep.subr.mxu1 %v4699_v6 }
0x1717   : > { %3898 = vmatpush3.msra.mxu1 %v4699_v6 }
0x17d0   : > { %v3890_v33 = vpop.f32.mrf.mxu1 }
0x17d2   : > { %v2588_v34 = vpop.f32.mrf.mxu1 }
0x17d3   : > { %3899 = vmatprep.mubr.msk.f32.mxu1 %vm466_vm1, %v2588_v34  ;;  %v4158_v34 = vld [vmem:[#allocation11 + $0x8] sm:$0xff] }
0x17d4   : > { %3900 = vmatmul.mubr.msk.f32.vlgmr.msra.gmra.mxu1 %vm466_vm1, %v3890_v33  ;;  %v4157_v33 = vld [vmem:[#allocation11 + $0x10] sm:$0xff] }
0x17d5   : > { %3924 = vmatprep.mubr.msk.f32.mxu1 %vm384_vm0, %v4679_v1 }
0x1894   : > { %v3901_v3 = vpop.f32.mrf.mxu1 }
0x1895   : > { %v2679_v35 = vadd.f32 %v3901_v3, %v3476_v2  ;;  %v4159_v2 = vld [vmem:[#allocation11] sm:$0xff] }
0x1896   : > { %v2669_v36 = vpop.f32.mrf.mxu1 }
0x1897   : > { %v3484_v37 = vmul.f32 -1.442695, %v2679_v35  ;;  %v2678_v5 = vadd.f32 %v3475_v4, %v2669_v36  ;;  %v3492_v35 = vld [vmem:[%s4661_s13 + $0x78] sm:$0xff] }
0x1899   : > { %4126 = vpow2.f32 %v3484_v37  ;;  %v3483_v38 = vmul.f32 -1.442695, %v2678_v5  ;;  %v3491_v37 = vld [vmem:[%s4661_s13 + $0x70] sm:$0xff] }
0x189b   : > { %4128 = vpow2.f32 %v3483_v38 }
0x18a6   : > { %v4127_v6 = vpop.eup %4126 }
0x18a7   : > { %v2687_v39 = vadd.f32 1.0, %v4127_v6 }
0x18a8   : > { %v4129_v40 = vpop.eup %4128 }
0x18a9   : > { %4130 = vrcp.f32 %v2687_v39  ;;  %v2686_v41 = vadd.f32 1.0, %v4129_v40 }
0x18ab   : > { %4132 = vrcp.f32 %v2686_v41 }
0x18b6   : > { %v4131_v42 = vpop.eup %4130 }
0x18b7   : > { %2697 = vrot.lane.b32.xlu1 %v4131_v42, %s4411_s27  ;;  %v2864_v54 = vsub.f32 1.0, %v4131_v42 }
0x18b8   : > { %v4133_v1 = vpop.eup %4132 }
0x18b9   : > { %2693 = vrot.lane.b32.xlu0 %v4133_v1, %s4411_s27  ;;  %v2700_v45 = vmul.f32 %v4133_v1, %v4974_v32 }
0x1929   : > { %v2698_v50 = vpop.permute.xlu1 %2697 }
0x192a   : > { %v2865_v51 = vsub.f32 1.0, %v2698_v50  ;;  %v2863_v52 = vmul.f32 %v2698_v50, %v4970_v24 }
0x192b   : > { %v2694_v43 = vpop.permute.xlu0 %2693 }
0x192c   : > { %v2701_v44 = vmul.f32 %v2694_v43, %v4970_v24 }
0x192e   : > { %3902 = vmatprep.subr.mxu0 %v2701_v44 }
0x192f   : > { %3903 = vmatpush3.msra.mxu0 %v2701_v44 }
0x1930   : > { %3904 = vmatprep.subr.mxu0 %v2700_v45 }
0x1931   : > { %3905 = vmatpush3.msra.mxu0 %v2700_v45 }
0x1932   : > { %3907 = vmatmul.mubr.msk.f32.vlgmr.msra.gmra.mxu0 %vm384_vm0, %v4715_v27  ;;  %3909 = vmatprep.subr.mxu0 %v4717_v28  ;;  %v3478_v27 = vld [vmem:[%s4661_s13 + $0x68] sm:$0xff] }
0x1933   : > { %3910 = vmatpush3.msra.mxu0 %v4717_v28 }
0x1934   : > { %3911 = vmatprep.subr.mxu0 %v4719_v29 }
0x1935   : > { %3912 = vmatpush3.msra.mxu0 %v4719_v29  ;;  %v3477_v29 = vld [vmem:[%s4661_s13 + $0x60] sm:$0xff] }
0x1936   : > { %3913 = vmatprep.subr.mxu0 %v4727_v30 }
0x1937   : > { %3914 = vmatpush3.msra.mxu0 %v4727_v30 }
0x1938   : > { %3915 = vmatprep.subr.mxu0 %v4731_v31 }
0x1939   : > { %3916 = vmatpush3.msra.mxu0 %v4731_v31 }
0x19f2   : > { %v3908_v46 = vpop.f32.mrf.mxu0 }
0x19f4   : > { %v2768_v47 = vpop.f32.mrf.mxu0 }
0x19f5   : > { %3917 = vmatprep.mubr.msk.f32.mxu0 %vm466_vm1, %v2768_v47 }
0x19f6   : > { %3918 = vmatmul.mubr.msk.f32.vlgmr.msra.gmra.mxu0 %vm466_vm1, %v3908_v46 }
0x19f7   : > { %3942 = vmatprep.mubr.msk.f32.mxu0 %vm384_vm0, %v4709_v21  ;;  %v2862_v21 = vmul.f32 %v4131_v42, %v4974_v32  ;;  %v4156_v32 = vld [vmem:[#allocation11 + $0x18] sm:$0xff] }
0x1ab6   : > { %v3919_v28 = vpop.f32.mrf.mxu0 }
0x1ab7   : > { %v2859_v48 = vadd.f32 %v3919_v28, %v3478_v27 }
0x1ab8   : > { %v2849_v49 = vpop.f32.mrf.mxu0 }
0x1ab9   : > { %4134 = vtanh.f32 %v2859_v48  ;;  %v2858_v30 = vadd.f32 %v3477_v29, %v2849_v49 }
0x1abb   : > { %4136 = vtanh.f32 %v2858_v30 }
0x1ac6   : > { %v4135_v31 = vpop.eup %4134 }
0x1ac7   : > { %v2867_v53 = vmul.f32 %v4135_v31, %v2865_v51 }
0x1ac8   : > { %v4137_v55 = vpop.eup %4136 }
0x1ac9   : > { %v5016_v56 = vadd.f32 %v2867_v53, %v2863_v52  ;;  %v2866_v57 = vmul.f32 %v4137_v55, %v2864_v54 }
0x1acb   : > { %3920 = vmatprep.subr.mxu1 %v5016_v56  ;;  %v5020_v58 = vadd.f32 %v2866_v57, %v2862_v21 }
0x1acc   : > { %3921 = vmatpush3.msra.mxu1 %v5016_v56 }
0x1acd   : > { %3922 = vmatprep.subr.mxu1 %v5020_v58 }
0x1ace   : > { %3923 = vmatpush3.msra.mxu1 %v5020_v58 }
0x1acf   : > { %3925 = vmatmul.mubr.msk.f32.vlgmr.msra.gmra.mxu1 %vm384_vm0, %v4150_v59  ;;  %3927 = vmatprep.subr.mxu1 %v4151_v60 }
0x1ad0   : > { %3928 = vmatpush3.msra.mxu1 %v4151_v60 }
0x1ad1   : > { %3929 = vmatprep.subr.mxu1 %v4152_v61 }
0x1ad2   : > { %3930 = vmatpush3.msra.mxu1 %v4152_v61 }
0x1ad3   : > { %3931 = vmatprep.subr.mxu1 %v4153_v62 }
0x1ad4   : > { %3932 = vmatpush3.msra.mxu1 %v4153_v62 }
0x1ad5   : > { %3933 = vmatprep.subr.mxu1 %v4154_v63 }
0x1ad6   : > { %3934 = vmatpush3.msra.mxu1 %v4154_v63 }
0x1b8f   : > { %v3926_v0 = vpop.f32.mrf.mxu1 }
0x1b91   : > { %v2942_v7 = vpop.f32.mrf.mxu1 }
0x1b92   : > { %3935 = vmatprep.mubr.msk.f32.mxu1 %vm466_vm1, %v2942_v7 }
0x1b93   : > { %3936 = vmatmul.mubr.msk.f32.vlgmr.msra.gmra.mxu1 %vm466_vm1, %v3926_v0 }
0x1c53   : > { %v3937_v9 = vpop.f32.mrf.mxu1 }
0x1c54   : > { %v3033_v11 = vadd.f32 %v3937_v9, %v3490_v8 }
0x1c55   : > { %v3023_v12 = vpop.f32.mrf.mxu1 }
0x1c56   : > { %v3498_v13 = vmul.f32 -1.442695, %v3033_v11  ;;  %v3032_v14 = vadd.f32 %v3489_v10, %v3023_v12 }
0x1c58   : > { %4138 = vpow2.f32 %v3498_v13  ;;  %v3497_v15 = vmul.f32 -1.442695, %v3032_v14 }
0x1c5a   : > { %4140 = vpow2.f32 %v3497_v15 }
0x1c65   : > { %v4139_v16 = vpop.eup %4138 }
0x1c66   : > { %v3041_v17 = vadd.f32 1.0, %v4139_v16 }
0x1c67   : > { %v4141_v18 = vpop.eup %4140 }
0x1c68   : > { %4142 = vrcp.f32 %v3041_v17  ;;  %v3040_v19 = vadd.f32 1.0, %v4141_v18 }
0x1c6a   : > { %4144 = vrcp.f32 %v3040_v19 }
0x1c75   : > { %v4143_v20 = vpop.eup %4142 }
0x1c76   : > { %3051 = vrot.lane.b32.xlu1 %v4143_v20, %s4411_s27  ;;  %v3218_v43 = vsub.f32 1.0, %v4143_v20  ;;  %v3216_v46 = vmul.f32 %v4143_v20, %v5020_v58 }
0x1c77   : > { %v4145_v22 = vpop.eup %4144 }
0x1c78   : > { %3047 = vrot.lane.b32.xlu0 %v4145_v22, %s4411_s27  ;;  %v3054_v25 = vmul.f32 %v4145_v22, %v5020_v58 }
0x1ce8   : > { %v3052_v39 = vpop.permute.xlu1 %3051 }
0x1ce9   : > { %v3219_v40 = vsub.f32 1.0, %v3052_v39  ;;  %v3217_v42 = vmul.f32 %v3052_v39, %v5016_v56 }
0x1cea   : > { %v3048_v23 = vpop.permute.xlu0 %3047 }
0x1ceb   : > { %v3055_v24 = vmul.f32 %v3048_v23, %v5016_v56 }
0x1ced   : > { %3938 = vmatprep.subr.mxu0 %v3055_v24 }
0x1cee   : > { %3939 = vmatpush3.msra.mxu0 %v3055_v24 }
0x1cef   : > { %3940 = vmatprep.subr.mxu0 %v3054_v25 }
0x1cf0   : > { %3941 = vmatpush3.msra.mxu0 %v3054_v25 }
0x1cf1   : > { %3943 = vmatmul.mubr.msk.f32.vlgmr.msra.gmra.mxu0 %vm384_vm0, %v4155_v26  ;;  %3945 = vmatprep.subr.mxu0 %v4156_v32 }
0x1cf2   : > { %3946 = vmatpush3.msra.mxu0 %v4156_v32 }
0x1cf3   : > { %3947 = vmatprep.subr.mxu0 %v4157_v33 }
0x1cf4   : > { %3948 = vmatpush3.msra.mxu0 %v4157_v33 }
0x1cf5   : > { %3949 = vmatprep.subr.mxu0 %v4158_v34 }
0x1cf6   : > { %3950 = vmatpush3.msra.mxu0 %v4158_v34 }
0x1cf7   : > { %3951 = vmatprep.subr.mxu0 %v4159_v2 }
0x1cf8   : > { %3952 = vmatpush3.msra.mxu0 %v4159_v2 }
0x1db1   : > { %v3944_v3 = vpop.f32.mrf.mxu0 }
0x1db3   : > { %v3122_v4 = vpop.f32.mrf.mxu0 }
0x1db4   : > { %3953 = vmatprep.mubr.msk.f32.mxu0 %vm466_vm1, %v3122_v4 }
0x1db5   : > { %3954 = vmatmul.mubr.msk.f32.vlgmr.msra.gmra.mxu0 %vm466_vm1, %v3944_v3 }
0x1e75   : > { %v3955_v36 = vpop.f32.mrf.mxu0 }
0x1e76   : > { %v3213_v5 = vadd.f32 %v3955_v36, %v3492_v35 }
0x1e77   : > { %v3203_v38 = vpop.f32.mrf.mxu0 }
0x1e78   : > { %4146 = vtanh.f32 %v3213_v5  ;;  %v3212_v6 = vadd.f32 %v3491_v37, %v3203_v38 }
0x1e7a   : > { %4148 = vtanh.f32 %v3212_v6 }
0x1e85   : > { %v4147_v41 = vpop.eup %4146 }
0x1e86   : > { %v3221_v1 = vmul.f32 %v4147_v41, %v3219_v40 }
0x1e87   : > { %v4149_v44 = vpop.eup %4148 }
0x1e88   : > { %v3223_v45 = vadd.f32 %v3221_v1, %v3217_v42  ;;  %v3220_v47 = vmul.f32 %v4149_v44, %v3218_v43 }
0x1e8a   : > { %v3222_v27 = vadd.f32 %v3220_v47, %v3216_v46  ;;  %3225 = vst.msk [vmem:[%s367_s11 + $0x8] sm:$0xff] %vm466_vm1, %v3223_v45 }
0x1e8c   : > { %3224 = vst.msk [vmem:[%s367_s11] sm:$0xff] %vm466_vm1, %v3222_v27 }
0x1e8d   : > { %4333 = shalt.err (!%p4330_p3)
}
0x1e8e   : > { %s4334_s20 = scalar_lea.hbm %s5046_s15, 256  ;;  %s4338_s29 = scalar_lea.hbm %s5099_s6, 512 }
0x1e8f   : > { %p4335_p8 = scmp.ne.s32.totalorder %s5046_s15, %s4334_s20  ;;  %p4339_p7 = scmp.lt.s32.totalorder %s5046_s15, %s5099_s6 }
0x1e90   : > { %p4340_p1 = scmp.lt.s32.totalorder %s4338_s29, %s4334_s20 }
0x1e91   : > { %p4336_p2 = pnand %p4335_p8, %p5128_p11 }
0x1e92   : > { %p4341_p13 = por %p4340_p1, %p4339_p7 }
0x1e93   : > { %p4337_p9 = pneg %p4336_p2 }
0x1e95   : > { %p4342_p0 = pnand %p4341_p13, %p4337_p9 }
0x1e97   : > { %4345 = shalt.err (!%p4342_p0)
}
0x1e98   : > { %s4413_s9 = smov 128   ;;  %s4414_s2 = smov 8  }
0x1e99   : > { %3976 = dma.vmem_to_hbm [thread:$0]  (%p5128_p11), %s5048_s17, 256, %s5046_s15, %s3227_s25, %s4413_s9, %s4413_s9, %s4414_s2  }
0x1e9a PF: > { %s3255_s11 = sand.u32 1, %s4388_s21   ;;  %p5129_p5 = scmp.ne.s32.totalorder %s5111_s28, 0 }
0x1e9b   : > { %p5130_p12 = scmp.ge.s32.totalorder %s4400_s24, 2  ;;  %s3256_s26 = scalar_lea.sflag [#allocation4], %s3255_s11 }
0x1e9d   : > { %p3999_p4 = pnand %p5130_p12, %p5129_p5 }
0x1e9f   : > { %p4000_p6 = pneg %p3999_p4 }
0x1ea1   : > { %4383 = dma.done.wait (%p4000_p6), %s3256_s26, 256  }
0x1ea2   : > { %4385 = vsyncadd (%p4000_p6), %s3256_s26, 4294967040  ;;  %p24_p10 = scmp.ge.s32.totalorder %s4550_s16, 4   ;;  %s5131_s21 = smov %s4392_s22 }
0x1ea3   : > { %s5132_s22 = smov %s4396_s23  ;;  %s5133_s23 = smov %s4566_s19 }
0x1ea4   : > { %s5134_s24 = smov %s4550_s16  ;;  %26 = sbr.rel (!%p24_p10) target bundleno = 13 (0xd), region = 132 }
0x1ea9   :  { %3261 = vsyncpa [#allocation3], 1 }
0x1eaa   :  { %3263 = vsyncpa [#allocation3 + $0x1], 1 }
0x1eab   :  { %3264 = vsyncpa [#allocation6], 1 }
0x1eac   :  { %3266 = vsyncpa [#allocation6 + $0x1], 1 }
0x1ead   :  { %3267 = vsyncpa [#allocation9], 1 }
0x1eae   :  { %3268 = vsyncpa [#allocation12], 1 }
0x1eaf   :  { %3269 = vsyncpa [#allocation4], 1 }
0x1eb0   :  { %3271 = vsyncpa [#allocation4 + $0x1], 1 }

</bundles_post_ra>
